<compile_context>
chip_gen: v6e
topology: v6e:2x2x1
jax: 0.10.0
libtpu: 0.0.40
codegen_flags: <defaults>
</compile_context>

<pallas_src>
import functools

import jax
import jax.numpy as jnp
from jax.experimental import pallas as pl
from jax.experimental.pallas import tpu as pltpu

KH = KW = 3
STRIDE = 2
_NEG = -1e30   # bias of padded (dummy) classes: exp(_NEG - max) == 0 exactly


# ---------------------------------------------------------------------------
# Pallas kernels
# ---------------------------------------------------------------------------
def conv_block_kernel(x_ref, w_ref, b_ref, o_ref):
    """Fused depthwise-3x3/stride-2 + pointwise-1x1 conv for IMGS images.

    x_ref: (IMGS, H, W, C)    channels-last input tile, H == 2*(Ho+1), W == 2*(Wo+1)
    w_ref: (9, C, C)          fused weight  w[k, cin, cout] = dw[k, cin] * pw[cin, cout]
    b_ref: (1, C)             fused bias    dw_b @ pw + pw_b   (f32)
    o_ref: (IMGS, Ho, Wo, C)  channels-last output tile
    """
    imgs, H, W, C = x_ref.shape
    _, Ho, Wo, _ = o_ref.shape

    for i in range(imgs):                               # static unroll; imgs is small
        # Parity reshape replaces strided slicing: x4[a, p, b, q, c] = x[2a+p, 2b+q, c].
        # Stays in the input dtype (pure data movement; no f32 upcast round-trip).
        x4 = x_ref[i].reshape(Ho + 1, 2, Wo + 1, 2, C)
        acc = None
        for ki in range(KH):                            # 9 accumulated MXU matmuls,
            a0, p = ki // 2, ki % 2                     # no (M, 9C) im2col concat
            for kj in range(KW):
                b0, q = kj // 2, kj % 2
                # tap[ho, wo, c] == x[2*ho + ki, 2*wo + kj, c]
                tap = x4[a0:a0 + Ho, p, b0:b0 + Wo, q, :].reshape(Ho * Wo, C)
                part = jnp.dot(tap, w_ref[ki * KW + kj],
                               preferred_element_type=jnp.float32)
                acc = part if acc is None else acc + part
        acc = acc + b_ref[...]                          # f32 bias add (v5e-safe VPU math)
        o_ref[i] = acc.reshape(Ho, Wo, C).astype(o_ref.dtype)


def head_kernel(x_ref, w_ref, b_ref, o_ref):
    """Linear + LogSoftmax(dim=1) on one batch row-tile.

    x_ref: (TB, F); w_ref: (F, Opad) pre-permuted/transposed/padded; b_ref: (1, Opad) f32.
    Padded classes have zero weight columns and a -1e30 bias, so they contribute
    exactly 0 to the softmax normalizer.
    """
    logits = jnp.dot(x_ref[...], w_ref[...],
                     preferred_element_type=jnp.float32) + b_ref[...]
    m = jnp.max(logits, axis=1, keepdims=True)
    lse = m + jnp.log(jnp.sum(jnp.exp(logits - m), axis=1, keepdims=True))
    o_ref[...] = logits - lse


# ---------------------------------------------------------------------------
# Small tiling / budgeting helpers (static, trace-time)
# ---------------------------------------------------------------------------
def _vmem_limit_bytes():
    """~3/4 of per-core VMEM: ~96 MiB on v5e/v6e (128 MiB), ~48 MiB on v7x (64 MiB)."""
    try:
        cap = int(pltpu.get_tpu_info().vmem_capacity_bytes)
    except Exception:
        cap = 64 * 1024 * 1024
    return int(min(96 * 1024 * 1024, (3 * cap) // 4))


def _images_per_step(batch, Ho, Wo):
    """Pack images per grid step: aim matmul M ~ 256 rows, but keep >= 2 grid steps
    (pipeline warm-up / both v7x TensorCores) whenever the batch allows it."""
    target = max(1, 256 // max(1, Ho * Wo))
    cap = max(1, batch // 2)
    best = 1
    for d in range(1, batch + 1):
        if batch % d == 0 and d <= min(target, cap):
            best = d
    return best


# ---------------------------------------------------------------------------
# Wrapper
# ---------------------------------------------------------------------------
@functools.partial(jax.jit, static_argnames=("out_features", "compute_dtype"))
def attention_forward(x_nchw, kparams, out_features, compute_dtype=jnp.float32):
    """Mirrors Attention.forward: N x (depthwise->pointwise), flatten, linear, log-softmax."""
    B = x_nchw.shape[0]
    vmem_limit = _vmem_limit_bytes()
    # One NCHW -> NHWC permute at the module boundary; channels-last everywhere after.
    x = jnp.transpose(x_nchw, (0, 2, 3, 1)).astype(compute_dtype)

    for (w_fused, b_fused) in kparams["blocks"]:
        _, H, W, C = x.shape
        Ho = (H - KH) // STRIDE + 1
        Wo = (W - KW) // STRIDE + 1
        He, We = 2 * (Ho + 1), 2 * (Wo + 1)      # == H, W when H, W are even
        if He > H or We > W:
            # Odd H/W: pad once in HBM (the pad row/col is never read by any tap)
            # instead of an O(H*W*C) in-kernel concat on the VPU load/store slots.
            x = jnp.pad(x, ((0, 0), (0, He - H), (0, We - W), (0, 0)))
        imgs = _images_per_step(B, Ho, Wo)
        x = pl.pallas_call(
            conv_block_kernel,
            grid=(B // imgs,),
            out_shape=jax.ShapeDtypeStruct((B, Ho, Wo, C), compute_dtype),
            in_specs=[
                pl.BlockSpec((imgs, He, We, C), lambda b: (b, 0, 0, 0)),  # streamed activations
                pl.BlockSpec((KH * KW, C, C), lambda b: (0, 0, 0)),       # VMEM-resident weight
                pl.BlockSpec((1, C), lambda b: (0, 0)),                   # VMEM-resident bias
            ],
            out_specs=pl.BlockSpec((imgs, Ho, Wo, C), lambda b: (b, 0, 0, 0)),
            compiler_params=pltpu.CompilerParams(
                dimension_semantics=("parallel",),      # shard batch steps over v7x's 2 TCs
                vmem_limit_bytes=vmem_limit),
        )(x, w_fused, b_fused)

    # NHWC flatten is a contiguous (free) reshape; PyTorch's NCHW flatten order is
    # folded into the pre-permuted head weight (see prepare_params).
    flat = x.reshape(B, -1)
    F = flat.shape[1]
    w_head, b_head = kparams["head"]
    Opad = w_head.shape[1]

    TB = B                                        # batch row-tile for the head
    for cand in (512, 256, 128):
        if B > cand and B % cand == 0:
            TB = cand
            break
    out_pad = pl.pallas_call(
        head_kernel,
        grid=(B // TB,),
        out_shape=jax.ShapeDtypeStruct((B, Opad), jnp.float32),
        in_specs=[
            pl.BlockSpec((TB, F), lambda i: (i, 0)),
            pl.BlockSpec((F, Opad), lambda i: (0, 0)),   # VMEM-resident weight
            pl.BlockSpec((1, Opad), lambda i: (0, 0)),   # VMEM-resident bias
        ],
        out_specs=pl.BlockSpec((TB, Opad), lambda i: (i, 0)),
        compiler_params=pltpu.CompilerParams(
            dimension_semantics=("parallel",),
            vmem_limit_bytes=vmem_limit),
    )(flat, w_head, b_head)
    return out_pad[:, :out_features]


# ---------------------------------------------------------------------------
# One-time parameter preparation (fusion + layout), done outside the forward pass
# ---------------------------------------------------------------------------
def prepare_params(params, in_channels, Ho_final, Wo_final, compute_dtype=jnp.float32):
    """Fold each depthwise conv into its pointwise conv (nine (C,C) matmuls per block),
    pre-permute/transpose the linear weight so the NHWC flatten feeds it directly, and
    pad the class dim to a multiple of 128 for a lane-dense head."""
    C = in_channels
    blocks = []
    for (dw_w, dw_b, pw_w, pw_b) in params["blocks"]:
        dww = dw_w.reshape(C, KH * KW).T                       # (9, C)     tap-major
        pww = pw_w.reshape(C, C).T                             # (cin, cout)
        w_fused = dww[:, :, None] * pww[None, :, :]            # (9, cin, cout)
        b_fused = (dw_b @ pww + pw_b).reshape(1, C)
        blocks.append((w_fused.astype(compute_dtype), b_fused.astype(jnp.float32)))
    lin_w, lin_b = params["linear"]
    O = lin_w.shape[0]
    Opad = -(-O // 128) * 128
    w_head = (lin_w.reshape(O, C, Ho_final, Wo_final)          # (O, c, ho, wo) PyTorch order
              .transpose(2, 3, 1, 0)                           # (ho, wo, c, O) NHWC-flatten order
              .reshape(C * Ho_final * Wo_final, O))
    w_head = jnp.pad(w_head, ((0, 0), (0, Opad - O)))          # dummy classes: zero weights
    b_head = jnp.pad(lin_b, (0, Opad - O), constant_values=_NEG).reshape(1, Opad)
    return {"blocks": blocks,
            "head": (w_head.astype(compute_dtype), b_head.astype(jnp.float32))}


# ---------------------------------------------------------------------------
# Deterministic parameter init (PyTorch-default-like uniform bounds)
# ---------------------------------------------------------------------------
def init_params(key, in_channels, in_features, out_features, N=1):
    params = {"blocks": []}
    for _ in range(N):
        key, k1, k2, k3, k4 = jax.random.split(key, 5)
        b_dw = 1.0 / (1 * KH * KW) ** 0.5          # groups == in_channels
        dw_w = jax.random.uniform(k1, (in_channels, 1, KH, KW), jnp.float32, -b_dw, b_dw)
        dw_b = jax.random.uniform(k2, (in_channels,), jnp.float32, -b_dw, b_dw)
        b_pw = 1.0 / in_channels ** 0.5
        pw_w = jax.random.uniform(k3, (in_channels, in_channels, 1, 1), jnp.float32, -b_pw, b_pw)
        pw_b = jax.random.uniform(k4, (in_channels,), jnp.float32, -b_pw, b_pw)
        params["blocks"].append((dw_w, dw_b, pw_w, pw_b))
    key, k5, k6 = jax.random.split(key, 3)
    b_l = 1.0 / in_features ** 0.5
    lin_w = jax.random.uniform(k5, (out_features, in_features), jnp.float32, -b_l, b_l)
    lin_b = jax.random.uniform(k6, (out_features,), jnp.float32, -b_l, b_l)
    params["linear"] = (lin_w, lin_b)
    return params


# ---------------------------------------------------------------------------
# Pure-JAX reference (correctness check only)
# ---------------------------------------------------------------------------
def reference_forward(x, params):
    out = x
    for (dw_w, dw_b, pw_w, pw_b) in params["blocks"]:
        C = out.shape[1]
        out = jax.lax.conv_general_dilated(
            out, dw_w, window_strides=(STRIDE, STRIDE), padding="VALID",
            dimension_numbers=("NCHW", "OIHW", "NCHW"), feature_group_count=C)
        out = out + dw_b.reshape(1, C, 1, 1)
        out = jax.lax.conv_general_dilated(
            out, pw_w, window_strides=(1, 1), padding="VALID",
            dimension_numbers=("NCHW", "OIHW", "NCHW"))
        out = out + pw_b.reshape(1, C, 1, 1)
    flat = out.reshape(out.shape[0], -1)
    lin_w, lin_b = params["linear"]
    logits = flat @ lin_w.T + lin_b
    return jax.nn.log_softmax(logits, axis=1)


if __name__ == "__main__":
    def run_case(B, C, H, W, N, out_features, key, check_bf16):
        Ho, Wo = H, W
        for _ in range(N):
            Ho = (Ho - KH) // STRIDE + 1
            Wo = (Wo - KW) // STRIDE + 1
        in_features = C * Ho * Wo
        key, kx = jax.random.split(key)
        x = jax.random.normal(kx, (B, C, H, W), jnp.float32)
        params = init_params(key, C, in_features, out_features, N=N)
        ref = reference_forward(x, params)

        # f32 path: strict check against the f32 reference
        kp32 = prepare_params(params, C, Ho, Wo, compute_dtype=jnp.float32)
        out = jax.block_until_ready(
            attention_forward(x, kp32, out_features, compute_dtype=jnp.float32))
        assert out.shape == (B, out_features)
        assert jnp.allclose(out, ref, atol=1e-4, rtol=1e-4), (out, ref)

        if check_bf16:
            # bf16 MXU path: bf16 HBM activations + bf16 matmul operands, f32 accumulation
            kp16 = prepare_params(params, C, Ho, Wo, compute_dtype=jnp.bfloat16)
            out16 = jax.block_until_ready(
                attention_forward(x, kp16, out_features, compute_dtype=jnp.bfloat16))
            assert out16.shape == (B, out_features)
            assert float(jnp.max(jnp.abs(out16 - ref))) < 0.1

    key = jax.random.PRNGKey(0)
    key, k1, k2 = jax.random.split(key, 3)
    # Primary config implied by the module (B=2, C=4, 16x16, N=1): f32 strict + bf16 path.
    run_case(B=2, C=4, H=16, W=16, N=1, out_features=10, key=k1, check_bf16=True)
    # Odd spatial + two blocks: exercises the wrapper-side pad and the block loop (f32 strict).
    run_case(B=2, C=4, H=15, W=15, N=2, out_features=10, key=k2, check_bf16=False)

    print("KERNEL_OK")
</pallas_src>

<mosaic_0001>
module attributes {stable_mosaic.version = 11 : i64} {
  func.func @conv_block_kernel(%arg0: i32, %arg1: memref<1x16x16x4xf32, #tpu.memory_space<vmem>>, %arg2: memref<9x4x4xf32, #tpu.memory_space<vmem>>, %arg3: memref<1x4xf32, #tpu.memory_space<vmem>>, %arg4: memref<1x7x7x4xf32, #tpu.memory_space<vmem>>) attributes {dimension_semantics = [#tpu.dimension_semantics<parallel>], iteration_bounds = array<i64: 2>, scalar_prefetch = 0 : i64, scratch_operands = 0 : i64, tpu.core_type = #tpu.core_type<tc>, window_params = [{transform_indices = @transform_0, window_bounds = array<i64: 1, 16, 16, 4>}, {pipeline_mode = #tpu.pipeline_mode<synchronous>, transform_indices = @transform_1, window_bounds = array<i64: 9, 4, 4>}, {pipeline_mode = #tpu.pipeline_mode<synchronous>, transform_indices = @transform_2, window_bounds = array<i64: 1, 4>}, {transform_indices = @transform_3, window_bounds = array<i64: 1, 7, 7, 4>}]} {
    %c0 = arith.constant 0 : index
    %c0_0 = arith.constant 0 : index
    %c0_1 = arith.constant 0 : index
    %c0_2 = arith.constant 0 : index
    %0 = vector.load %arg1[%c0, %c0_0, %c0_1, %c0_2] : memref<1x16x16x4xf32, #tpu.memory_space<vmem>>, vector<1x16x16x4xf32>
    %1 = vector.shape_cast %0 : vector<1x16x16x4xf32> to vector<16x16x4xf32>
    %2 = vector.shape_cast %1 : vector<16x16x4xf32> to vector<8x2x8x2x4xf32>
    %3 = vector.extract_strided_slice %2 {offsets = [0, 0, 0, 0, 0], sizes = [7, 1, 7, 1, 4], strides = [1, 1, 1, 1, 1]} : vector<8x2x8x2x4xf32> to vector<7x1x7x1x4xf32>
    %4 = vector.shape_cast %3 : vector<7x1x7x1x4xf32> to vector<7x7x4xf32>
    %5 = vector.shape_cast %4 : vector<7x7x4xf32> to vector<49x4xf32>
    %c0_3 = arith.constant 0 : index
    %c0_4 = arith.constant 0 : index
    %c0_5 = arith.constant 0 : index
    %6 = vector.load %arg2[%c0_3, %c0_4, %c0_5] : memref<9x4x4xf32, #tpu.memory_space<vmem>>, vector<1x4x4xf32>
    %7 = vector.shape_cast %6 : vector<1x4x4xf32> to vector<4x4xf32>
    %cst = arith.constant dense<0.000000e+00> : vector<49x4xf32>
    %8 = tpu.matmul %5, %7, %cst {dimension_numbers = #tpu.dot_dimension_numbers<[1], [0], [0], [1], [0, 0, 1, 1], [], []>} : vector<49x4xf32>, vector<4x4xf32>, vector<49x4xf32> -> vector<49x4xf32>
    %9 = vector.extract_strided_slice %2 {offsets = [0, 0, 0, 1, 0], sizes = [7, 1, 7, 1, 4], strides = [1, 1, 1, 1, 1]} : vector<8x2x8x2x4xf32> to vector<7x1x7x1x4xf32>
    %10 = vector.shape_cast %9 : vector<7x1x7x1x4xf32> to vector<7x7x4xf32>
    %11 = vector.shape_cast %10 : vector<7x7x4xf32> to vector<49x4xf32>
    %c1 = arith.constant 1 : index
    %c0_6 = arith.constant 0 : index
    %c0_7 = arith.constant 0 : index
    %12 = vector.load %arg2[%c1, %c0_6, %c0_7] : memref<9x4x4xf32, #tpu.memory_space<vmem>>, vector<1x4x4xf32>
    %13 = vector.shape_cast %12 : vector<1x4x4xf32> to vector<4x4xf32>
    %cst_8 = arith.constant dense<0.000000e+00> : vector<49x4xf32>
    %14 = tpu.matmul %11, %13, %cst_8 {dimension_numbers = #tpu.dot_dimension_numbers<[1], [0], [0], [1], [0, 0, 1, 1], [], []>} : vector<49x4xf32>, vector<4x4xf32>, vector<49x4xf32> -> vector<49x4xf32>
    %15 = arith.addf %8, %14 : vector<49x4xf32>
    %16 = vector.extract_strided_slice %2 {offsets = [0, 0, 1, 0, 0], sizes = [7, 1, 7, 1, 4], strides = [1, 1, 1, 1, 1]} : vector<8x2x8x2x4xf32> to vector<7x1x7x1x4xf32>
    %17 = vector.shape_cast %16 : vector<7x1x7x1x4xf32> to vector<7x7x4xf32>
    %18 = vector.shape_cast %17 : vector<7x7x4xf32> to vector<49x4xf32>
    %c2 = arith.constant 2 : index
    %c0_9 = arith.constant 0 : index
    %c0_10 = arith.constant 0 : index
    %19 = vector.load %arg2[%c2, %c0_9, %c0_10] : memref<9x4x4xf32, #tpu.memory_space<vmem>>, vector<1x4x4xf32>
    %20 = vector.shape_cast %19 : vector<1x4x4xf32> to vector<4x4xf32>
    %cst_11 = arith.constant dense<0.000000e+00> : vector<49x4xf32>
    %21 = tpu.matmul %18, %20, %cst_11 {dimension_numbers = #tpu.dot_dimension_numbers<[1], [0], [0], [1], [0, 0, 1, 1], [], []>} : vector<49x4xf32>, vector<4x4xf32>, vector<49x4xf32> -> vector<49x4xf32>
    %22 = arith.addf %15, %21 : vector<49x4xf32>
    %23 = vector.extract_strided_slice %2 {offsets = [0, 1, 0, 0, 0], sizes = [7, 1, 7, 1, 4], strides = [1, 1, 1, 1, 1]} : vector<8x2x8x2x4xf32> to vector<7x1x7x1x4xf32>
    %24 = vector.shape_cast %23 : vector<7x1x7x1x4xf32> to vector<7x7x4xf32>
    %25 = vector.shape_cast %24 : vector<7x7x4xf32> to vector<49x4xf32>
    %c3 = arith.constant 3 : index
    %c0_12 = arith.constant 0 : index
    %c0_13 = arith.constant 0 : index
    %26 = vector.load %arg2[%c3, %c0_12, %c0_13] : memref<9x4x4xf32, #tpu.memory_space<vmem>>, vector<1x4x4xf32>
    %27 = vector.shape_cast %26 : vector<1x4x4xf32> to vector<4x4xf32>
    %cst_14 = arith.constant dense<0.000000e+00> : vector<49x4xf32>
    %28 = tpu.matmul %25, %27, %cst_14 {dimension_numbers = #tpu.dot_dimension_numbers<[1], [0], [0], [1], [0, 0, 1, 1], [], []>} : vector<49x4xf32>, vector<4x4xf32>, vector<49x4xf32> -> vector<49x4xf32>
    %29 = arith.addf %22, %28 : vector<49x4xf32>
    %30 = vector.extract_strided_slice %2 {offsets = [0, 1, 0, 1, 0], sizes = [7, 1, 7, 1, 4], strides = [1, 1, 1, 1, 1]} : vector<8x2x8x2x4xf32> to vector<7x1x7x1x4xf32>
    %31 = vector.shape_cast %30 : vector<7x1x7x1x4xf32> to vector<7x7x4xf32>
    %32 = vector.shape_cast %31 : vector<7x7x4xf32> to vector<49x4xf32>
    %c4 = arith.constant 4 : index
    %c0_15 = arith.constant 0 : index
    %c0_16 = arith.constant 0 : index
    %33 = vector.load %arg2[%c4, %c0_15, %c0_16] : memref<9x4x4xf32, #tpu.memory_space<vmem>>, vector<1x4x4xf32>
    %34 = vector.shape_cast %33 : vector<1x4x4xf32> to vector<4x4xf32>
    %cst_17 = arith.constant dense<0.000000e+00> : vector<49x4xf32>
    %35 = tpu.matmul %32, %34, %cst_17 {dimension_numbers = #tpu.dot_dimension_numbers<[1], [0], [0], [1], [0, 0, 1, 1], [], []>} : vector<49x4xf32>, vector<4x4xf32>, vector<49x4xf32> -> vector<49x4xf32>
    %36 = arith.addf %29, %35 : vector<49x4xf32>
    %37 = vector.extract_strided_slice %2 {offsets = [0, 1, 1, 0, 0], sizes = [7, 1, 7, 1, 4], strides = [1, 1, 1, 1, 1]} : vector<8x2x8x2x4xf32> to vector<7x1x7x1x4xf32>
    %38 = vector.shape_cast %37 : vector<7x1x7x1x4xf32> to vector<7x7x4xf32>
    %39 = vector.shape_cast %38 : vector<7x7x4xf32> to vector<49x4xf32>
    %c5 = arith.constant 5 : index
    %c0_18 = arith.constant 0 : index
    %c0_19 = arith.constant 0 : index
    %40 = vector.load %arg2[%c5, %c0_18, %c0_19] : memref<9x4x4xf32, #tpu.memory_space<vmem>>, vector<1x4x4xf32>
    %41 = vector.shape_cast %40 : vector<1x4x4xf32> to vector<4x4xf32>
    %cst_20 = arith.constant dense<0.000000e+00> : vector<49x4xf32>
    %42 = tpu.matmul %39, %41, %cst_20 {dimension_numbers = #tpu.dot_dimension_numbers<[1], [0], [0], [1], [0, 0, 1, 1], [], []>} : vector<49x4xf32>, vector<4x4xf32>, vector<49x4xf32> -> vector<49x4xf32>
    %43 = arith.addf %36, %42 : vector<49x4xf32>
    %44 = vector.extract_strided_slice %2 {offsets = [1, 0, 0, 0, 0], sizes = [7, 1, 7, 1, 4], strides = [1, 1, 1, 1, 1]} : vector<8x2x8x2x4xf32> to vector<7x1x7x1x4xf32>
    %45 = vector.shape_cast %44 : vector<7x1x7x1x4xf32> to vector<7x7x4xf32>
    %46 = vector.shape_cast %45 : vector<7x7x4xf32> to vector<49x4xf32>
    %c6 = arith.constant 6 : index
    %c0_21 = arith.constant 0 : index
    %c0_22 = arith.constant 0 : index
    %47 = vector.load %arg2[%c6, %c0_21, %c0_22] : memref<9x4x4xf32, #tpu.memory_space<vmem>>, vector<1x4x4xf32>
    %48 = vector.shape_cast %47 : vector<1x4x4xf32> to vector<4x4xf32>
    %cst_23 = arith.constant dense<0.000000e+00> : vector<49x4xf32>
    %49 = tpu.matmul %46, %48, %cst_23 {dimension_numbers = #tpu.dot_dimension_numbers<[1], [0], [0], [1], [0, 0, 1, 1], [], []>} : vector<49x4xf32>, vector<4x4xf32>, vector<49x4xf32> -> vector<49x4xf32>
    %50 = arith.addf %43, %49 : vector<49x4xf32>
    %51 = vector.extract_strided_slice %2 {offsets = [1, 0, 0, 1, 0], sizes = [7, 1, 7, 1, 4], strides = [1, 1, 1, 1, 1]} : vector<8x2x8x2x4xf32> to vector<7x1x7x1x4xf32>
    %52 = vector.shape_cast %51 : vector<7x1x7x1x4xf32> to vector<7x7x4xf32>
    %53 = vector.shape_cast %52 : vector<7x7x4xf32> to vector<49x4xf32>
    %c7 = arith.constant 7 : index
    %c0_24 = arith.constant 0 : index
    %c0_25 = arith.constant 0 : index
    %54 = vector.load %arg2[%c7, %c0_24, %c0_25] : memref<9x4x4xf32, #tpu.memory_space<vmem>>, vector<1x4x4xf32>
    %55 = vector.shape_cast %54 : vector<1x4x4xf32> to vector<4x4xf32>
    %cst_26 = arith.constant dense<0.000000e+00> : vector<49x4xf32>
    %56 = tpu.matmul %53, %55, %cst_26 {dimension_numbers = #tpu.dot_dimension_numbers<[1], [0], [0], [1], [0, 0, 1, 1], [], []>} : vector<49x4xf32>, vector<4x4xf32>, vector<49x4xf32> -> vector<49x4xf32>
    %57 = arith.addf %50, %56 : vector<49x4xf32>
    %58 = vector.extract_strided_slice %2 {offsets = [1, 0, 1, 0, 0], sizes = [7, 1, 7, 1, 4], strides = [1, 1, 1, 1, 1]} : vector<8x2x8x2x4xf32> to vector<7x1x7x1x4xf32>
    %59 = vector.shape_cast %58 : vector<7x1x7x1x4xf32> to vector<7x7x4xf32>
    %60 = vector.shape_cast %59 : vector<7x7x4xf32> to vector<49x4xf32>
    %c8 = arith.constant 8 : index
    %c0_27 = arith.constant 0 : index
    %c0_28 = arith.constant 0 : index
    %61 = vector.load %arg2[%c8, %c0_27, %c0_28] : memref<9x4x4xf32, #tpu.memory_space<vmem>>, vector<1x4x4xf32>
    %62 = vector.shape_cast %61 : vector<1x4x4xf32> to vector<4x4xf32>
    %cst_29 = arith.constant dense<0.000000e+00> : vector<49x4xf32>
    %63 = tpu.matmul %60, %62, %cst_29 {dimension_numbers = #tpu.dot_dimension_numbers<[1], [0], [0], [1], [0, 0, 1, 1], [], []>} : vector<49x4xf32>, vector<4x4xf32>, vector<49x4xf32> -> vector<49x4xf32>
    %64 = arith.addf %57, %63 : vector<49x4xf32>
    %c0_30 = arith.constant 0 : index
    %c0_31 = arith.constant 0 : index
    %65 = vector.load %arg3[%c0_30, %c0_31] : memref<1x4xf32, #tpu.memory_space<vmem>>, vector<1x4xf32>
    %66 = vector.broadcast %65 : vector<1x4xf32> to vector<49x4xf32>
    %67 = arith.addf %64, %66 : vector<49x4xf32>
    %68 = vector.shape_cast %67 : vector<49x4xf32> to vector<7x7x4xf32>
    %c0_32 = arith.constant 0 : index
    %c0_33 = arith.constant 0 : index
    %c0_34 = arith.constant 0 : index
    %c0_35 = arith.constant 0 : index
    %69 = vector.load %arg4[%c0_32, %c0_33, %c0_34, %c0_35] : memref<1x7x7x4xf32, #tpu.memory_space<vmem>>, vector<1x7x7x4xf32>
    %70 = vector.shape_cast %69 : vector<1x7x7x4xf32> to vector<7x7x4xf32>
    %71 = vector.shape_cast %68 : vector<7x7x4xf32> to vector<1x7x7x4xf32>
    tpu.vector_store %arg4[%c0_32, %c0_33, %c0_34, %c0_35], %71 {strides = array<i32>} : memref<1x7x7x4xf32, #tpu.memory_space<vmem>>, vector<1x7x7x4xf32>,
    return
  }
  func.func @transform_0(%arg0: i32) -> (i32, i32, i32, i32) {
    %c0_i32 = arith.constant 0 : i32
    %c0_i32_0 = arith.constant 0 : i32
    %c0_i32_1 = arith.constant 0 : i32
    %c0_i32_2 = arith.constant 0 : i32
    return %arg0, %c0_i32, %c0_i32_0, %c0_i32_1 : i32, i32, i32, i32
  }
  func.func @transform_1(%arg0: i32) -> (i32, i32, i32) {
    %c0_i32 = arith.constant 0 : i32
    %c0_i32_0 = arith.constant 0 : i32
    %c0_i32_1 = arith.constant 0 : i32
    %c0_i32_2 = arith.constant 0 : i32
    return %c0_i32, %c0_i32_0, %c0_i32_1 : i32, i32, i32
  }
  func.func @transform_2(%arg0: i32) -> (i32, i32) {
    %c0_i32 = arith.constant 0 : i32
    %c0_i32_0 = arith.constant 0 : i32
    %c0_i32_1 = arith.constant 0 : i32
    return %c0_i32, %c0_i32_0 : i32, i32
  }
  func.func @transform_3(%arg0: i32) -> (i32, i32, i32, i32) {
    %c0_i32 = arith.constant 0 : i32
    %c0_i32_0 = arith.constant 0 : i32
    %c0_i32_1 = arith.constant 0 : i32
    %c0_i32_2 = arith.constant 0 : i32
    return %arg0, %c0_i32, %c0_i32_0, %c0_i32_1 : i32, i32, i32, i32
  }
}

module attributes {stable_mosaic.version = 11 : i64} {
  func.func @head_kernel(%arg0: i32, %arg1: memref<2x196xf32, #tpu.memory_space<vmem>>, %arg2: memref<196x128xf32, #tpu.memory_space<vmem>>, %arg3: memref<1x128xf32, #tpu.memory_space<vmem>>, %arg4: memref<2x128xf32, #tpu.memory_space<vmem>>) attributes {dimension_semantics = [#tpu.dimension_semantics<parallel>], iteration_bounds = array<i64: 1>, scalar_prefetch = 0 : i64, scratch_operands = 0 : i64, tpu.core_type = #tpu.core_type<tc>, window_params = [{transform_indices = @transform_0, window_bounds = array<i64: 2, 196>}, {pipeline_mode = #tpu.pipeline_mode<synchronous>, transform_indices = @transform_1, window_bounds = array<i64: 196, 128>}, {pipeline_mode = #tpu.pipeline_mode<synchronous>, transform_indices = @transform_2, window_bounds = array<i64: 1, 128>}, {transform_indices = @transform_3, window_bounds = array<i64: 2, 128>}]} {
    %c0 = arith.constant 0 : index
    %c0_0 = arith.constant 0 : index
    %0 = vector.load %arg1[%c0, %c0_0] : memref<2x196xf32, #tpu.memory_space<vmem>>, vector<2x196xf32>
    %c0_1 = arith.constant 0 : index
    %c0_2 = arith.constant 0 : index
    %1 = vector.load %arg2[%c0_1, %c0_2] : memref<196x128xf32, #tpu.memory_space<vmem>>, vector<196x128xf32>
    %cst = arith.constant dense<0.000000e+00> : vector<2x128xf32>
    %2 = tpu.matmul %0, %1, %cst {dimension_numbers = #tpu.dot_dimension_numbers<[1], [0], [0], [1], [0, 0, 1, 1], [], []>} : vector<2x196xf32>, vector<196x128xf32>, vector<2x128xf32> -> vector<2x128xf32>
    %c0_3 = arith.constant 0 : index
    %c0_4 = arith.constant 0 : index
    %3 = vector.load %arg3[%c0_3, %c0_4] : memref<1x128xf32, #tpu.memory_space<vmem>>, vector<1x128xf32>
    %4 = vector.broadcast %3 : vector<1x128xf32> to vector<2x128xf32>
    %5 = arith.addf %2, %4 : vector<2x128xf32>
    %cst_5 = arith.constant dense<0xFF800000> : vector<2xf32>
    %6 = vector.multi_reduction <maximumf>, %5, %cst_5 [1] : vector<2x128xf32> to vector<2xf32>
    %7 = vector.shape_cast %6 : vector<2xf32> to vector<2x1xf32>
    %8 = vector.broadcast %7 : vector<2x1xf32> to vector<2x128xf32>
    %9 = arith.subf %5, %8 : vector<2x128xf32>
    %10 = math.exp %9 : vector<2x128xf32>
    %cst_6 = arith.constant dense<0.000000e+00> : vector<2xf32>
    %11 = vector.multi_reduction <add>, %10, %cst_6 [1] : vector<2x128xf32> to vector<2xf32>
    %12 = vector.shape_cast %11 : vector<2xf32> to vector<2x1xf32>
    %13 = math.log %12 : vector<2x1xf32>
    %14 = arith.addf %7, %13 : vector<2x1xf32>
    %15 = vector.broadcast %14 : vector<2x1xf32> to vector<2x128xf32>
    %16 = arith.subf %5, %15 : vector<2x128xf32>
    %c0_7 = arith.constant 0 : index
    %c0_8 = arith.constant 0 : index
    %17 = vector.load %arg4[%c0_7, %c0_8] : memref<2x128xf32, #tpu.memory_space<vmem>>, vector<2x128xf32>
    tpu.vector_store %arg4[%c0_7, %c0_8], %16 {strides = array<i32>} : memref<2x128xf32, #tpu.memory_space<vmem>>, vector<2x128xf32>,
    return
  }
  func.func @transform_0(%arg0: i32) -> (i32, i32) {
    %c0_i32 = arith.constant 0 : i32
    %c0_i32_0 = arith.constant 0 : i32
    return %arg0, %c0_i32 : i32, i32
  }
  func.func @transform_1(%arg0: i32) -> (i32, i32) {
    %c0_i32 = arith.constant 0 : i32
    %c0_i32_0 = arith.constant 0 : i32
    %c0_i32_1 = arith.constant 0 : i32
    return %c0_i32, %c0_i32_0 : i32, i32
  }
  func.func @transform_2(%arg0: i32) -> (i32, i32) {
    %c0_i32 = arith.constant 0 : i32
    %c0_i32_0 = arith.constant 0 : i32
    %c0_i32_1 = arith.constant 0 : i32
    return %c0_i32, %c0_i32_0 : i32, i32
  }
  func.func @transform_3(%arg0: i32) -> (i32, i32) {
    %c0_i32 = arith.constant 0 : i32
    %c0_i32_0 = arith.constant 0 : i32
    return %arg0, %c0_i32 : i32, i32
  }
}

</mosaic_0001>

<bundles_post_ra>
// kernel: attention_forward.3
= control target key start
LH: loop header
LB: loop body
LE: loop exit
PB: predicated region body
PF: predicated region fallthrough
CT: control target
= control target key end

     0   :  { %v196_v1 = vmov 0.0   ;;  %vm58_vm0 = vcmask 556032   ;;  %s332_s0 = inlined_call_operand.vmem [shape: f32[2,196], index: 0, kind: input, shape index: {}]   ;;  %s333_s1 = inlined_call_operand.vmem [shape: f32[196,128], index: 1, kind: input, shape index: {}]   ;;  %s334_s2 = inlined_call_operand.vmem [shape: f32[1,128], index: 2, kind: input, shape index: {}]   ;;  %s335_s3 = inlined_call_operand.hbm [shape: f32[2,128], index: 3, kind: output, shape index: {}]  }
   0x1   :  { %v31_v0 = vld [vmem:[%s333_s1 + $0x78] sm:$0xff]  ;;  %65 = vmatprep.subr.mxu0 %v196_v1  ;;  %v30_v2 = vld [vmem:[%s333_s1 + $0x70] sm:$0xff]  ;;  %v29_v3 = vld [vmem:[%s333_s1 + $0x68] sm:$0xff] }
   0x2   :  { %66 = vmatpush1.msra.mxu0 %v31_v0  ;;  %v28_v4 = vld [vmem:[%s333_s1 + $0x60] sm:$0xff]  ;;  %v27_v5 = vld [vmem:[%s333_s1 + $0x58] sm:$0xff]  ;;  %v26_v7 = vld [vmem:[%s333_s1 + $0x50] sm:$0xff] }
   0x3   :  { %67 = vmatprep.subr.mxu0 %v196_v1  ;;  %v240_v6 = vld.sshfl [vmem:[%s332_s0] sm:$0x33 pattern:$0x76325410] }
   0x4   :  { %68 = vmatpush1.msra.mxu0 %v30_v2  ;;  %v56_v8 = vcombine.high %v240_v6, %v240_v6 }
   0x5   :  { %69 = vmatprep.subr.mxu0 %v196_v1 }
   0x6   :  { %70 = vmatpush1.msra.mxu0 %v29_v3 }
   0x7   :  { %71 = vmatprep.subr.mxu0 %v196_v1 }
   0x8   :  { %72 = vmatpush1.msra.mxu0 %v28_v4 }
   0x9   :  { %73 = vmatprep.subr.mxu0 %v196_v1 }
   0xa   :  { %8 = vsyncpa [#allocation3], 0  ;;  %74 = vmatpush1.msra.mxu0 %v27_v5  ;;  %v25_v9 = vld [vmem:[%s333_s1 + $0x48] sm:$0xff]  ;;  %167 = vmatprep.mubr.msk.f32.mxu0 %vm58_vm0, %v56_v8  ;;  %v24_v10 = vld [vmem:[%s333_s1 + $0x40] sm:$0xff]  ;;  %vm61_vm1 = vcmask 1043456   ;;  %vm135_vm2 = vcmask 1041408  }
   0xb   :  { %75 = vmatprep.subr.mxu0 %v196_v1  ;;  %v23_v11 = vld [vmem:[%s333_s1 + $0x38] sm:$0xff]  ;;  %v22_v12 = vld [vmem:[%s333_s1 + $0x30] sm:$0xff]  ;;  %v21_v13 = vld [vmem:[%s333_s1 + $0x28] sm:$0xff] }
   0xc   :  { %76 = vmatpush1.msra.mxu0 %v26_v7  ;;  %v20_v14 = vld [vmem:[%s333_s1 + $0x20] sm:$0xff]  ;;  %v19_v15 = vld [vmem:[%s333_s1 + $0x18] sm:$0xff]  ;;  %v18_v16 = vld [vmem:[%s333_s1 + $0x10] sm:$0xff] }
   0xd   :  { %77 = vmatprep.subr.mxu0 %v196_v1  ;;  %v17_v17 = vld [vmem:[%s333_s1 + $0x8] sm:$0xff]  ;;  %v16_v18 = vld [vmem:[%s333_s1] sm:$0xff]  ;;  %v39_v20 = vld [vmem:[%s333_s1 + $0xb8] sm:$0xff] }
   0xe   :  { %78 = vmatpush1.msra.mxu0 %v25_v9  ;;  %v40_v19 = vld [vmem:[%s333_s1 + $0xc0] sm:$0xf]  ;;  %v38_v21 = vld [vmem:[%s333_s1 + $0xb0] sm:$0xff]  ;;  %v37_v22 = vld [vmem:[%s333_s1 + $0xa8] sm:$0xff] }
   0xf   :  { %79 = vmatprep.subr.mxu0 %v196_v1  ;;  %v36_v23 = vld [vmem:[%s333_s1 + $0xa0] sm:$0xff]  ;;  %v35_v24 = vld [vmem:[%s333_s1 + $0x98] sm:$0xff]  ;;  %v34_v25 = vld [vmem:[%s333_s1 + $0x90] sm:$0xff] }
  0x10   :  { %80 = vmatpush1.msra.mxu0 %v24_v10  ;;  %v33_v26 = vld [vmem:[%s333_s1 + $0x88] sm:$0xff]  ;;  %v32_v27 = vld [vmem:[%s333_s1 + $0x80] sm:$0xff]  ;;  %s197_s1 = smov [#allocation2]  }
  0x11   :  { %81 = vmatprep.subr.mxu0 %v196_v1  ;;  %v164_v28 = vld [vmem:[%s334_s2] ss:$0 sm:$0xff]  ;;  %s156_s10 = sshll.u32 %s197_s1, 4  ;;  %s157_s10 = int_to_ptr.vmem [resolvable:$true] %s156_s10 }
  0x12   :  { %82 = vmatpush1.msra.mxu0 %v23_v11  ;;  %s174_s2 = scalar_lea.vmem %s157_s10, 32  ;;  %p179_p1 = scmp.lt.s32.totalorder %s157_s10, %s157_s10 }
  0x13   :  { %83 = vmatprep.subr.mxu0 %v196_v1  ;;  %p175_p0 = scmp.ne.s32.totalorder %s157_s10, %s174_s2  ;;  %p180_p2 = scmp.lt.s32.totalorder %s174_s2, %s174_s2 }
  0x14   :  { %84 = vmatpush1.msra.mxu0 %v22_v12 }
  0x15   :  { %85 = vmatprep.subr.mxu0 %v196_v1  ;;  %p181_p3 = por %p180_p2, %p179_p1 }
  0x16   :  { %86 = vmatpush1.msra.mxu0 %v21_v13 }
  0x17   :  { %87 = vmatprep.subr.mxu0 %v196_v1  ;;  %p182_p4 = pnand %p181_p3, %p175_p0 }
  0x18   :  { %88 = vmatpush1.msra.mxu0 %v20_v14 }
  0x19   :  { %89 = vmatprep.subr.mxu0 %v196_v1 }
  0x1a   :  { %90 = vmatpush1.msra.mxu0 %v19_v15 }
  0x1b   :  { %91 = vmatprep.subr.mxu0 %v196_v1 }
  0x1c   :  { %92 = vmatpush1.msra.mxu0 %v18_v16 }
  0x1d   :  { %93 = vmatprep.subr.mxu0 %v196_v1 }
  0x1e   :  { %94 = vmatpush1.msra.mxu0 %v17_v17 }
  0x1f   :  { %95 = vmatprep.subr.mxu0 %v196_v1 }
  0x20   :  { %96 = vmatpush1.msra.mxu0 %v16_v18 }
  0x21   :  { %111 = vmatprep.subr.mxu0 %v196_v1 }
  0x22   :  { %166 = vmatpush2.msk.msra.mxu0 %vm61_vm1, %v40_v19 }
  0x23   :  { %113 = vmatprep.subr.mxu0 %v196_v1 }
  0x24   :  { %114 = vmatpush2.msra.mxu0 %v39_v20 }
  0x25   :  { %115 = vmatprep.subr.mxu0 %v196_v1 }
  0x26   :  { %116 = vmatpush2.msra.mxu0 %v38_v21 }
  0x27   :  { %117 = vmatprep.subr.mxu0 %v196_v1 }
  0x28   :  { %118 = vmatpush2.msra.mxu0 %v37_v22 }
  0x29   :  { %119 = vmatprep.subr.mxu0 %v196_v1 }
  0x2a   :  { %120 = vmatpush2.msra.mxu0 %v36_v23 }
  0x2b   :  { %121 = vmatprep.subr.mxu0 %v196_v1 }
  0x2c   :  { %122 = vmatpush2.msra.mxu0 %v35_v24 }
  0x2d   :  { %123 = vmatprep.subr.mxu0 %v196_v1 }
  0x2e   :  { %124 = vmatpush2.msra.mxu0 %v34_v25 }
  0x2f   :  { %125 = vmatprep.subr.mxu0 %v196_v1 }
  0x30   :  { %126 = vmatpush2.msra.mxu0 %v33_v26 }
  0x31   :  { %127 = vmatprep.subr.mxu0 %v196_v1 }
  0x32   :  { %128 = vmatpush2.msra.mxu0 %v32_v27 }
  0x33   :  { %130 = vmatmul.mubr.f32.vlgmr.msra.gmra.mxu0 %v240_v6 }
  0xf3   :  { %v131_v29 = vpop.f32.mrf.mxu0 }
  0xf4   :  { %v132_v30 = vadd.f32 %v164_v28, %v131_v29 }
  0xf5   :  { %v133_v31 = vpop.f32.mrf.mxu0 }
  0xf6   :  { %v136_v32 = vsel %vm135_vm2, %v132_v30, -inf }
  0xf7   :  { %137 = vmax.xlane.f32.xlu0 %v136_v32 }
 0x180   :  { %v138_v33 = vpop.xlane.xlu0 %137 }
 0x181   :  { %v139_v34 = vsub.f32 %v132_v30, %v138_v33 }
 0x183   :  { %v140_v35 = vmul.f32 1.442695, %v139_v34 }
 0x185   :  { %170 = vpow2.f32 %v140_v35 }
 0x192   :  { %v171_v36 = vpop.eup %170 }
 0x193   :  { %v142_v37 = vsel %vm135_vm2, %v171_v36, 0.0 }
 0x194   :  { %143 = vadd.xlane.f32.xlu0 %v142_v37 }
 0x21d   :  { %v144_v38 = vpop.xlane.xlu0 %143 }
 0x21e   :  { %172 = vlog2.f32 %v144_v38 }
 0x22b   :  { %v173_v39 = vpop.eup %172 }
 0x22c   :  { %v146_v40 = vmul.f32 0.6931472, %v173_v39 }
 0x22e   :  { %v147_v41 = vadd.f32 %v146_v40, %v138_v33 }
 0x230   :  { %v148_v42 = vsub.f32 %v132_v30, %v147_v41 }
 0x232   :  { %149 = vst [vmem:[#allocation2] sm:$0x3] %v148_v42 }
 0x233   :  { %185 = shalt.err (!%p182_p4)
}
 0x234   :  { %159 = dma.vmem_to_hbm [thread:$0]  %s157_s10, 32, %s335_s3, [#allocation3]  }
 0x235   :  { %194 = dma.done.wait [#allocation3], 32  }
 0x236   :  { %195 = vsyncadd [#allocation3], 4294967264 }
 0x237   :  { %163 = vsyncpa [#allocation3], 1 }

// kernel: attention_forward.2
= control target key start
LH: loop header
LB: loop body
LE: loop exit
PB: predicated region body
PF: predicated region fallthrough
CT: control target
= control target key end

     0   :  { %s4323_s12 = smov 0   ;;  %s6506_s0 = inlined_call_operand.vmem [shape: f32[2,16,16,4], index: 0, kind: input, shape index: {}]   ;;  %s6507_s1 = inlined_call_operand.vmem [shape: f32[9,4,4], index: 1, kind: input, shape index: {}]   ;;  %s6508_s2 = inlined_call_operand.vmem [shape: f32[1,4], index: 2, kind: input, shape index: {}]   ;;  %s6509_s3 = inlined_call_operand.vmem [shape: f32[2,7,7,4], index: 3, kind: output, shape index: {}]  }
   0x1 LB: > { %s3867_s13 = sadd.s32 4294967295, %s4297_s12   ;;  %p3871_p0 = scmp.ge.s32.totalorder %s4297_s12, 1  ;;  %s4297_s12 = sphi %s4323_s12, %s13_s12  }
   0x2   : > { %p137_p1 = scmp.lt.s32.totalorder %s4297_s12, 3 }
   0x4   : > { %p138_p2 = pnand %p3871_p0, %p137_p1 }
   0x6   : > { %141 = sbr.rel (%p138_p2) target bundleno = 465 (0x1d1), region = 32 }
   0xb   : > { %v3875_v0 = vld [vmem:[%s6507_s1 + $0x4] sm:$0xf]  ;;  %vm1004_vm0 = vcmask 1043456   ;;  %p161_p3 = scmp.lt.s32.totalorder %s3867_s13, 1  ;;  %v235_v1 = vlaneseq  ;;  %v6512_v2 = vmov 0.0   ;;  %vm4301_vm1 = vmmov 0  }
   0xc   : > { %4037 = vmatprep.subr.mxu0 %v6512_v2  ;;  %4244 = vmatprep.subr.mxu1 %v6512_v2  ;;  %v4300_v3 = vmov 1983009808   ;;  %vm940_vm2 = vcmask 1041409   ;;  %vm942_vm3 = vcmask 1042434   ;;  %vm944_vm4 = vcmask 1043459  }
   0xd   : > { %4038 = vmatpush3.msk.msra.mxu0 %vm1004_vm0, %v3875_v0  ;;  %4245 = vmatpush3.msk.msra.mxu1 %vm1004_vm0, %v3875_v0  ;;  %s6845_s13 = smov (!%p161_p3, %s3867_s13), 1  ;;  %v233_v4 = vunpack.c.l.s4 %v4300_v3  ;;  %v4340_v5 = vshrl.u32 %v235_v1, 7  ;;  %vm946_vm5 = vcmask 1044484   ;;  %vm948_vm6 = vcmask 1045509   ;;  %v3892_v3 = vld [vmem:[%s6507_s1 + $0x8] sm:$0xf] }
   0xe   : > { %4039 = vmatprep.mubr.msk.f32.mxu0 %vm4301_vm1, %v6512_v2  ;;  %4051 = vmatprep.mubr.msk.f32.mxu1 %vm4301_vm1, %v6512_v2  ;;  %s3964_s16 = sshll.u32 %s6845_s13, 8  ;;  %vm950_vm7 = vcmask 1046534   ;;  %vm952_vm8 = vcmask 1047559   ;;  %vm989_vm9 = vcmask 31744   ;;  %vm3804_vm10 = vcmask 30720   ;;  %s4246_s11 = smul.u32 56, %s6845_s13 }
   0xf   : > { %6626 = vst [vmem:[#allocation2_spill] sm:$0xff] %v4340_v5  ;;  %4083 = vmatprep.subr.mxu0 %v6512_v2  ;;  %v234_v6 = vunpack.c.0.s8 %v233_v4  ;;  %4060 = vmatprep.subr.mxu1 %v6512_v2  ;;  %s4352_s19 = scalar_lea.vmem %s6506_s0, %s3964_s16  ;;  %v4361_v11 = vsub.s32 1, %v4340_v5  ;;  %v4374_v19 = vsub.s32 0, %v4340_v5 }
  0x10   : > { %v171_v7 = vld [vmem:[%s4352_s19] sm:$0xff]  ;;  %v172_v8 = vld [vmem:[%s4352_s19 + $0x8] sm:$0xff]  ;;  %s6422_s15 = scalar_lea.vmem %s6509_s3, %s4246_s11 }
  0x11   : > { %v175_v9 = vld [vmem:[%s4352_s19 + $0x20] sm:$0xff]  ;;  %v4358_v10 = vsub.s32 %v234_v6, %v4340_v5  ;;  %v231_v12 = vcombine.high %v171_v7, %v171_v7  ;;  %v248_v13 = vcombine.high %v172_v8, %v172_v8  ;;  %v188_v15 = vld [vmem:[%s4352_s19 + $0x88] sm:$0xff] }
  0x12   : > { %v299_v14 = vcombine.high %v175_v9, %v175_v9  ;;  %v520_v23 = vcombine.high %v188_v15, %v188_v15  ;;  %v191_v44 = vld [vmem:[%s4352_s19 + $0xa0] sm:$0xff]  ;;  %v192_v49 = vld [vmem:[%s4352_s19 + $0xa8] sm:$0xff] }
  0x13   : > { %6627 = vst [vmem:[#allocation3_spill] sm:$0xff] %v4358_v10  ;;  %v4365_v16 = vrot.slane %v171_v7, %v4358_v10  ;;  %v4368_v17 = vrot.slane %v172_v8, %v4358_v10  ;;  %v4371_v18 = vrot.slane %v175_v9, %v4358_v10  ;;  %v4377_v20 = vrot.slane %v231_v12, %v4358_v10  ;;  %v183_v5 = vld [vmem:[%s4352_s19 + $0x60] sm:$0xff] }
  0x14   : > { %v4380_v21 = vrot.slane %v248_v13, %v4358_v10  ;;  %v313_v22 = vrot.slane %v299_v14, %v4358_v10  ;;  %v4441_v52 = vrot.slane %v188_v15, %v4358_v10  ;;  %v4444_v53 = vrot.slane %v520_v23, %v4358_v10  ;;  %v176_v15 = vld [vmem:[%s4352_s19 + $0x28] sm:$0xff] }
  0x15   : > { %v246_v24 = vcombine.high %v4365_v16, %v4365_v16  ;;  %v263_v25 = vcombine.high %v4368_v17, %v4368_v17  ;;  %v314_v26 = vcombine.high %v4371_v18, %v4371_v18  ;;  %v747_v27 = vrot.slane %v4365_v16, %v4361_v11 }
  0x16   : > { %v247_v28 = vcombine.high %v4377_v20, %v4377_v20  ;;  %v4393_v29 = vcombine.high %v313_v22, %v313_v22  ;;  %v755_v30 = vrot.slane %v4377_v20, %v4361_v11  ;;  %v763_v31 = vrot.slane %v4368_v17, %v4361_v11 }
  0x17   : > { %v751_v32 = vrot.slane %v246_v24, %v4361_v11  ;;  %v767_v33 = vrot.slane %v263_v25, %v4361_v11  ;;  %v771_v34 = vrot.slane %v4380_v21, %v4361_v11  ;;  %v775_v35 = vrot.slane %v4371_v18, %v4361_v11 }
  0x18   : > { %v759_v36 = vrot.slane %v247_v28, %v4361_v11  ;;  %v4407_v37 = vrot.slane %v314_v26, %v4361_v11  ;;  %v4410_v38 = vrot.slane %v313_v22, %v4361_v11  ;;  %v4414_v39 = vrot.slane %v4393_v29, %v4361_v11 }
  0x19   : > { %v941_v40 = vsel %vm940_vm2, %v751_v32, %v747_v27  ;;  %v4418_v41 = vrot.slane %v246_v24, %v4374_v19  ;;  %v4421_v42 = vrot.slane %v247_v28, %v4374_v19  ;;  %v4424_v43 = vrot.slane %v263_v25, %v4374_v19  ;;  %v195_v32 = vld [vmem:[%s4352_s19 + $0xc0] sm:$0xff] }
  0x1a   : > { %v943_v45 = vsel %vm942_vm3, %v755_v30, %v941_v40  ;;  %v4429_v46 = vrot.slane %v314_v26, %v4374_v19  ;;  %v4432_v47 = vrot.slane %v313_v22, %v4374_v19  ;;  %v2809_v48 = vsel %vm940_vm2, %v4407_v37, %v775_v35  ;;  %v179_v26 = vld [vmem:[%s4352_s19 + $0x40] sm:$0xff] }
  0x1b   : > { %v945_v50 = vsel %vm944_vm4, %v759_v36, %v943_v45  ;;  %v2810_v51 = vsel %vm942_vm3, %v4410_v38, %v2809_v48  ;;  %v571_v56 = vcombine.high %v191_v44, %v191_v44  ;;  %v4452_v57 = vrot.slane %v191_v44, %v4358_v10 }
  0x1c   : > { %v947_v54 = vsel %vm946_vm5, %v763_v31, %v945_v50  ;;  %v4449_v55 = vsel %vm944_vm4, %v4414_v39, %v2810_v51  ;;  %v4457_v59 = vcombine.high %v4441_v52, %v4441_v52  ;;  %v588_v60 = vcombine.high %v192_v49, %v192_v49 }
  0x1d   : > { %6628 = vst [vmem:[#allocation4_spill] sm:$0xff] %v4449_v55  ;;  %v949_v58 = vsel %vm948_vm6, %v767_v33, %v947_v54  ;;  %v4460_v61 = vrot.slane %v192_v49, %v4358_v10  ;;  %v4464_v63 = vrot.slane %v571_v56, %v4358_v10  ;;  %v4468_v0 = vcombine.high %v4452_v57, %v4452_v57 }
  0x1e   : > { %v951_v62 = vsel %vm950_vm7, %v771_v34, %v949_v58  ;;  %v4472_v1 = vrot.slane %v4441_v52, %v4361_v11  ;;  %v4479_v6 = vrot.slane %v588_v60, %v4358_v10  ;;  %v4485_v8 = vrot.slane %v4457_v59, %v4361_v11 }
  0x1f   : > { %v953_v4 = vsel %vm952_vm8, %v775_v35, %v951_v62  ;;  %v603_v7 = vcombine.high %v4460_v61, %v4460_v61  ;;  %v4490_v9 = vcombine.high %v4464_v63, %v4464_v63  ;;  %v4494_v12 = vrot.slane %v4444_v53, %v4361_v11 }
  0x20   : > { %6629 = vst [vmem:[#allocation5_spill] sm:$0xff] %v4479_v6  ;;  %6630 = vst [vmem:[#allocation6_spill] sm:$0xff] %v4485_v8  ;;  %4040 = vmatmul.mubr.msk.f32.vlgmr.msra.gmra.mxu0 %vm989_vm9, %v953_v4  ;;  %v4498_v13 = vrot.slane %v4452_v57, %v4361_v11  ;;  %v4502_v14 = vrot.slane %v4468_v0, %v4361_v11  ;;  %v4509_v23 = vrot.slane %v4464_v63, %v4361_v11 }
  0x21   : > { %6631 = vst [vmem:[#allocation7_spill] sm:$0xff] %v4494_v12  ;;  %v903_v24 = vrot.slane %v4460_v61, %v4361_v11  ;;  %v907_v25 = vrot.slane %v603_v7, %v4361_v11  ;;  %4084 = vmatpush3.msk.msra.mxu0 %vm1004_vm0, %v3892_v3  ;;  %v4518_v27 = vrot.slane %v4490_v9, %v4361_v11 }
  0x22   : > { %6632 = vst [vmem:[#allocation8_spill] sm:$0xff] %v4498_v13  ;;  %6633 = vst [vmem:[#allocation9_spill] sm:$0xff] %v4502_v14  ;;  %v4522_v28 = vrot.slane %v4479_v6, %v4361_v11  ;;  %v975_v30 = vsel %vm940_vm2, %v4485_v8, %v4472_v1  ;;  %v4528_v31 = vrot.slane %v603_v7, %v4374_v19  ;;  %4042 = vmatprep.mubr.msk.f32.mxu0 %vm4301_vm1, %v6512_v2 }
  0x23   : > { %6634 = vst [vmem:[#allocation10_spill] sm:$0xff] %v4509_v23  ;;  %6635 = vst [vmem:[#allocation11_spill] sm:$0xff] %v4518_v27  ;;  %v976_v33 = vsel %vm942_vm3, %v4494_v12, %v975_v30  ;;  %v4537_v34 = vrot.slane %v4479_v6, %v4374_v19  ;;  %v4540_v35 = vsel %vm940_vm2, %v907_v25, %v903_v24  ;;  %4129 = vmatprep.subr.mxu0 %v6512_v2 }
  0x24   : > { %6636 = vst [vmem:[#allocation12_spill] sm:$0xff] %v4522_v28  ;;  %6637 = vst [vmem:[#allocation13_spill] sm:$0xff] %v4528_v31  ;;  %v316_v36 = vcombine.high %v176_v15, %v176_v15  ;;  %v977_v40 = vsel %vm944_vm4, %v4498_v13, %v976_v33  ;;  %v4546_v44 = vrot.slane %v176_v15, %v4358_v10  ;;  %v196_v15 = vld [vmem:[%s4352_s19 + $0xc8] sm:$0xff] }
  0x25   : > { %6638 = vst [vmem:[#allocation14_spill] sm:$0xff] %v4537_v34  ;;  %6639 = vst [vmem:[#allocation15_spill] sm:$0xff] %v4540_v35  ;;  %v367_v45 = vcombine.high %v179_v26, %v179_v26  ;;  %v4549_v48 = vrot.slane %v179_v26, %v4358_v10  ;;  %v978_v49 = vsel %vm946_vm5, %v4502_v14, %v977_v40 }
  0x26   : > { %v4554_v50 = vrot.slane %v316_v36, %v4358_v10  ;;  %v954_v51 = vsel %vm940_vm2, %v4410_v38, %v4407_v37  ;;  %v639_v54 = vcombine.high %v195_v32, %v195_v32  ;;  %v979_v56 = vsel %vm948_vm6, %v4509_v23, %v978_v49  ;;  %v741_v37 = vld [vmem:[%s6507_s1] sm:$0xf] }
  0x27   : > { %v4563_v58 = vcombine.high %v4546_v44, %v4546_v44  ;;  %v4566_v60 = vrot.slane %v367_v45, %v4358_v10  ;;  %v4570_v62 = vcombine.high %v4549_v48, %v4549_v48  ;;  %v980_v3 = vsel %vm950_vm7, %v4518_v27, %v979_v56 }
  0x28   : > { %v4579_v38 = vrot.slane %v4546_v44, %v4361_v11  ;;  %v4583_v4 = vrot.slane %v4554_v50, %v4361_v11  ;;  %v4587_v7 = vrot.slane %v4549_v48, %v4361_v11  ;;  %v981_v26 = vsel %vm952_vm8, %v903_v24, %v980_v3 }
  0x29   : > { %v4593_v30 = vcombine.high %v4566_v60, %v4566_v60  ;;  %v4597_v33 = vrot.slane %v4563_v58, %v4361_v11  ;;  %v807_v36 = vrot.slane %v4570_v62, %v4361_v11  ;;  %4052 = vmatmul.mubr.msk.f32.vlgmr.msra.gmra.mxu1 %vm989_vm9, %v981_v26  ;;  %v811_v40 = vrot.slane %v4566_v60, %v4361_v11  ;;  %v180_v26 = vld [vmem:[%s4352_s19 + $0x48] sm:$0xff] }
  0x2a   : > { %6640 = vst [vmem:[#allocation16_spill] sm:$0xff] %v4579_v38  ;;  %6641 = vst [vmem:[#allocation17_spill] sm:$0xff] %v4583_v4  ;;  %v955_v24 = vsel %vm942_vm3, %v4414_v39, %v954_v51  ;;  %v4607_v45 = vrot.slane %v195_v32, %v4358_v10  ;;  %v4610_v49 = vrot.slane %v639_v54, %v4358_v10  ;;  %4061 = vmatpush3.msk.msra.mxu1 %vm1004_vm0, %v741_v37 }
  0x2b   : > { %6642 = vst [vmem:[#allocation18_spill] sm:$0xff] %v4587_v7  ;;  %6643 = vst [vmem:[#allocation19_spill] sm:$0xff] %v4597_v33  ;;  %4054 = vmatprep.mubr.msk.f32.mxu1 %vm4301_vm1, %v6512_v2  ;;  %v956_v56 = vsel %vm944_vm4, %v4579_v38, %v955_v24  ;;  %v4618_v3 = vrot.slane %v196_v15, %v4358_v10  ;;  %v982_v39 = vsel %vm940_vm2, %v4522_v28, %v907_v25  ;;  %v187_v38 = vld [vmem:[%s4352_s19 + $0x80] sm:$0xff] }
  0x2c   : > { %v957_v32 = vsel %vm946_vm5, %v4597_v33, %v956_v56  ;;  %v4625_v51 = vsel %vm940_vm2, %v811_v40, %v807_v36  ;;  %v4629_v54 = vcombine.high %v4607_v45, %v4607_v45  ;;  %v4633_v37 = vcombine.high %v4610_v49, %v4610_v49  ;;  %4106 = vmatprep.subr.mxu1 %v6512_v2 }
  0x2d   : > { %6644 = vst [vmem:[#allocation20_spill] sm:$0xff] %v4625_v51  ;;  %v958_v25 = vsel %vm948_vm6, %v4583_v4, %v957_v32  ;;  %v4641_v24 = vcombine.high %v4618_v3, %v4618_v3  ;;  %v4645_v56 = vrot.slane %v4607_v45, %v4361_v11  ;;  %v4649_v22 = vrot.slane %v4610_v49, %v4361_v11 }
  0x2e   : > { %v959_v27 = vsel %vm950_vm7, %v4587_v7, %v958_v25  ;;  %v4656_v2 = vrot.slane %v4629_v54, %v4361_v11  ;;  %v4660_v32 = vrot.slane %v4633_v37, %v4361_v11  ;;  %v4664_v23 = vrot.slane %v4618_v3, %v4361_v11 }
  0x2f   : > { %6645 = vst [vmem:[#allocation21_spill] sm:$0xff] %v4641_v24  ;;  %6646 = vst [vmem:[#allocation22_spill] sm:$0xff] %v4645_v56  ;;  %v960_v14 = vsel %vm952_vm8, %v807_v36, %v959_v27  ;;  %v935_v13 = vrot.slane %v4641_v24, %v4361_v11  ;;  %v983_v25 = vsel %vm942_vm3, %v4645_v56, %v982_v39  ;;  %v6651_v7 = vmov 0.0  }
  0x30   : > { %6647 = vst [vmem:[#allocation23_spill] sm:$0xff] %v4649_v22  ;;  %6648 = vst [vmem:[#allocation24_spill] sm:$0xff] %v4656_v2  ;;  %v384_v28 = vcombine.high %v180_v26, %v180_v26  ;;  %4043 = vmatmul.mubr.msk.f32.gmra.mxu0 %vm989_vm9, %v960_v14  ;;  %v984_v35 = vsel %vm944_vm4, %v4656_v2, %v983_v25  ;;  %v4675_v12 = vrot.slane %v180_v26, %v4358_v10  ;;  %v184_v2 = vld [vmem:[%s4352_s19 + $0x68] sm:$0xff] }
  0x31   : > { %6649 = vst [vmem:[#allocation25_spill] sm:$0xff] %v4660_v32  ;;  %6650 = vst [vmem:[#allocation26_spill] sm:$0xff] %v4664_v23  ;;  %v435_v8 = vcombine.high %v183_v5, %v183_v5  ;;  %v4678_v27 = vrot.slane %v183_v5, %v4358_v10  ;;  %v985_v36 = vsel %vm946_vm5, %v4649_v22, %v984_v35  ;;  %4045 = vmatprep.mubr.msk.f32.mxu0 %vm4301_vm1, %v6651_v7  ;;  %v4705_v22 = vld.sshfl [vmem:[%s4352_s19 + $0xe0] sm:$0xff pattern:$0x76325410] }
  0x32   : > { %v4685_v39 = vrot.slane %v384_v28, %v4358_v10  ;;  %v4689_v14 = vrot.slane %v4593_v30, %v4361_v11  ;;  %v656_v26 = vcombine.high %v196_v15, %v196_v15  ;;  %v986_v25 = vsel %vm948_vm6, %v4660_v32, %v985_v36  ;;  %6653 = vst [vmem:[#allocation28_spill] sm:$0xff] %v4705_v22 }
  0x33   : > { %v4695_v5 = vcombine.high %v4675_v12, %v4675_v12  ;;  %v4698_v35 = vrot.slane %v435_v8, %v4358_v10  ;;  %v4702_v28 = vcombine.high %v4678_v27, %v4678_v27  ;;  %v987_v15 = vsel %vm950_vm7, %v4664_v23, %v986_v25 }
  0x34   : > { %6652 = vst [vmem:[#allocation27_spill] sm:$0xff] %v4689_v14  ;;  %v4711_v36 = vrot.slane %v4675_v12, %v4361_v11  ;;  %v4715_v32 = vrot.slane %v4685_v39, %v4361_v11  ;;  %v4719_v8 = vrot.slane %v4678_v27, %v4361_v11  ;;  %v988_v56 = vsel %vm952_vm8, %v935_v13, %v987_v15 }
  0x35   : > { %v451_v4 = vcombine.high %v4698_v35, %v4698_v35  ;;  %v4727_v25 = vrot.slane %v4695_v5, %v4361_v11  ;;  %v4731_v23 = vrot.slane %v4702_v28, %v4361_v11  ;;  %4055 = vmatmul.mubr.msk.f32.gmra.mxu1 %vm989_vm9, %v988_v56  ;;  %v839_v33 = vrot.slane %v4698_v35, %v4361_v11 }
  0x36   : > { %6654 = vst [vmem:[#allocation29_spill] sm:$0xff] %v4711_v36  ;;  %6655 = vst [vmem:[#allocation30_spill] sm:$0xff] %v4715_v32  ;;  %v961_v51 = vsel %vm940_vm2, %v4689_v14, %v811_v40  ;;  %v4739_v15 = vrot.slane %v656_v26, %v4358_v10  ;;  %4057 = vmatprep.mubr.msk.f32.mxu1 %vm4301_vm1, %v6651_v7  ;;  %v452_v34 = vcombine.high %v184_v2, %v184_v2 }
  0x37   : > { %6656 = vst [vmem:[#allocation31_spill] sm:$0xff] %v4719_v8  ;;  %6657 = vst [vmem:[#allocation32_spill] sm:$0xff] %v4727_v25  ;;  %v843_v55 = vrot.slane %v451_v4, %v4361_v11  ;;  %v962_v6 = vsel %vm942_vm3, %v4711_v36, %v961_v51  ;;  %v4748_v56 = vrot.slane %v451_v4, %v4374_v19 }
  0x38   : > { %6658 = vst [vmem:[#allocation33_spill] sm:$0xff] %v4731_v23  ;;  %v963_v31 = vsel %vm944_vm4, %v4727_v25, %v962_v6  ;;  %v939_v40 = vrot.slane %v4739_v15, %v4361_v11  ;;  %v2784_v26 = vrot.slane %v4705_v22, %v4361_v11  ;;  %v4757_v14 = vrot.slane %v184_v2, %v4358_v10 }
  0x39   : > { %6659 = vst [vmem:[#allocation34_spill] sm:$0xff] %v4748_v56  ;;  %v964_v24 = vsel %vm946_vm5, %v4715_v32, %v963_v31  ;;  %v4762_v51 = vsel %vm940_vm2, %v843_v55, %v839_v33  ;;  %v4765_v4 = vrot.slane %v452_v34, %v4358_v10  ;;  %v503_v36 = vcombine.high %v187_v38, %v187_v38 }
  0x3a   : > { %6660 = vst [vmem:[#allocation35_spill] sm:$0xff] %v4762_v51  ;;  %v965_v6 = vsel %vm948_vm6, %v4719_v8, %v964_v24  ;;  %4058 = vmatmul.mubr.msk.f32.gmra.mxu1 %vm989_vm9, %v939_v40  ;;  %v2844_v25 = vsel %vm940_vm2, %v939_v40, %v935_v13  ;;  %v4773_v2 = vcombine.high %v4757_v14, %v4757_v14 }
  0x3b   : > { %v4776_v31 = vrot.slane %v187_v38, %v4358_v10  ;;  %v966_v32 = vsel %vm950_vm7, %v4731_v23, %v965_v6  ;;  %v4781_v34 = vsel %vm942_vm3, %v2784_v26, %v2844_v25  ;;  %4062 = vmatprep.mubr.msk.f32.mxu1 %vm4301_vm1, %v6651_v7  ;;  %v4786_v24 = vrot.slane %v503_v36, %v4358_v10 }
  0x3c   : > { %6661 = vst [vmem:[#allocation36_spill] sm:$0xff] %v4781_v34  ;;  %v4790_v13 = vrot.slane %v4757_v14, %v4361_v11  ;;  %v967_v40 = vsel %vm952_vm8, %v839_v33, %v966_v32  ;;  %v4799_v25 = vrot.slane %v4773_v2, %v4361_v11  ;;  %v4803_v26 = vrot.slane %v4765_v4, %v4361_v11 }
  0x3d   : > { %v4795_v38 = vcombine.high %v4776_v31, %v4776_v31  ;;  %4046 = vmatmul.mubr.msk.f32.gmra.mxu0 %vm989_vm9, %v967_v40  ;;  %v4808_v36 = vcombine.high %v4786_v24, %v4786_v24  ;;  %v4812_v33 = vrot.slane %v4776_v31, %v4361_v11  ;;  %v4816_v32 = vrot.slane %v4786_v24, %v4361_v11 }
  0x3e   : > { %6662 = vst [vmem:[#allocation37_spill] sm:$0xff] %v4790_v13  ;;  %6663 = vst [vmem:[#allocation38_spill] sm:$0xff] %v4799_v25  ;;  %v968_v6 = vsel %vm940_vm2, %v4790_v13, %v843_v55  ;;  %4048 = vmatprep.mubr.msk.f32.mxu0 %vm4301_vm1, %v6651_v7  ;;  %v1111_v23 = vrot.slane %v4365_v16, %v4374_v19  ;;  %v1119_v8 = vrot.slane %v4377_v20, %v4374_v19 }
  0x3f   : > { %6664 = vst [vmem:[#allocation39_spill] sm:$0xff] %v4803_v26  ;;  %6665 = vst [vmem:[#allocation40_spill] sm:$0xff] %v4812_v33  ;;  %v4824_v40 = vrot.slane %v4795_v38, %v4361_v11  ;;  %v969_v34 = vsel %vm942_vm3, %v4799_v25, %v968_v6  ;;  %v871_v51 = vrot.slane %v4808_v36, %v4361_v11 }
  0x40   : > { %6666 = vst [vmem:[#allocation41_spill] sm:$0xff] %v4816_v32  ;;  %v970_v55 = vsel %vm944_vm4, %v4803_v26, %v969_v34  ;;  %v1127_v13 = vrot.slane %v4368_v17, %v4374_v19  ;;  %v1135_v10 = vrot.slane %v4380_v21, %v4374_v19  ;;  %v1139_v16 = vrot.slane %v4371_v18, %v4374_v19 }
  0x41   : > { %6667 = vst [vmem:[#allocation42_spill] sm:$0xff] %v4824_v40  ;;  %v971_v6 = vsel %vm946_vm5, %v4812_v33, %v970_v55  ;;  %v1304_v20 = vsel %vm940_vm2, %v4418_v41, %v1111_v23  ;;  %v332_v25 = vcombine.high %v4554_v50, %v4554_v50  ;;  %v4852_v17 = vsel %vm940_vm2, %v4472_v1, %v871_v51 }
  0x42   : > { %v972_v34 = vsel %vm948_vm6, %v4824_v40, %v971_v6  ;;  %6668 = vst [vmem:[#allocation43_spill] sm:$0xff] %v4852_v17  ;;  %v1305_v26 = vsel %vm942_vm3, %v1119_v8, %v1304_v20  ;;  %v4857_v55 = vrot.slane %v4393_v29, %v4374_v19  ;;  %v4865_v33 = vsel %vm940_vm2, %v4429_v46, %v1139_v16  ;;  %v177_v40 = vld [vmem:[%s4352_s19 + $0x30] sm:$0xff] }
  0x43   : > { %v973_v18 = vsel %vm950_vm7, %v4816_v32, %v972_v34  ;;  %v1306_v23 = vsel %vm944_vm4, %v4421_v42, %v1305_v26  ;;  %v4869_v1 = vrot.slane %v4546_v44, %v4374_v19  ;;  %v4875_v29 = vrot.slane %v4563_v58, %v4374_v19 }
  0x44   : > { %v974_v6 = vsel %vm952_vm8, %v871_v51, %v973_v18  ;;  %v1307_v20 = vsel %vm946_vm5, %v1127_v13, %v1306_v23  ;;  %v4879_v34 = vrot.slane %v4554_v50, %v4374_v19  ;;  %v4886_v44 = vrot.slane %v4549_v48, %v4374_v19  ;;  %v3901_v18 = vld [vmem:[%s6507_s1 + $0xc] sm:$0xf] }
  0x45   : > { %4049 = vmatmul.mubr.msk.f32.gmra.mxu0 %vm989_vm9, %v974_v6  ;;  %v1308_v26 = vsel %vm948_vm6, %v4424_v43, %v1307_v20  ;;  %v4890_v51 = vrot.slane %v4570_v62, %v4374_v19  ;;  %v1311_v58 = vsel %vm940_vm2, %v4432_v47, %v4429_v46  ;;  %v1472_v23 = vrot.slane %v332_v25, %v4374_v19 }
  0x46   : > { %6669 = vst [vmem:[#allocation44_spill] sm:$0xff] %v4886_v44  ;;  %v1309_v50 = vsel %vm950_vm7, %v1135_v10, %v1308_v26  ;;  %4085 = vmatprep.mubr.msk.f32.mxu0 %vm4301_vm1, %v6651_v7  ;;  %v1312_v48 = vsel %vm942_vm3, %v4857_v55, %v1311_v58  ;;  %v264_v62 = vcombine.high %v4380_v21, %v4380_v21 }
  0x47   : > { %6670 = vst [vmem:[#allocation45_spill] sm:$0xff] %v4890_v51  ;;  %v1310_v6 = vsel %vm952_vm8, %v1139_v16, %v1309_v50  ;;  %v1313_v20 = vsel %vm944_vm4, %v4869_v1, %v1312_v48  ;;  %v1493_v26 = vsel %vm940_vm2, %v1119_v8, %v4418_v41  ;;  %v4913_v32 = vrot.slane %v4566_v60, %v4374_v19 }
  0x48   : > { %4063 = vmatmul.mubr.msk.f32.vlgmr.msra.gmra.mxu1 %vm989_vm9, %v1310_v6  ;;  %v1314_v25 = vsel %vm946_vm5, %v4875_v29, %v1313_v20  ;;  %v1468_v58 = vrot.slane %v264_v62, %v4374_v19  ;;  %v1494_v21 = vsel %vm942_vm3, %v4421_v42, %v1493_v26  ;;  %v4923_v16 = vrot.slane %v4593_v30, %v4374_v19 }
  0x49   : > { %6671 = vst [vmem:[#allocation46_spill] sm:$0xff] %v4913_v32  ;;  %4107 = vmatpush3.msk.msra.mxu1 %vm1004_vm0, %v3901_v18  ;;  %4065 = vmatprep.mubr.msk.f32.mxu1 %vm4301_vm1, %v6651_v7  ;;  %v1315_v41 = vsel %vm948_vm6, %v4879_v34, %v1314_v25  ;;  %v1495_v60 = vsel %vm944_vm4, %v1127_v13, %v1494_v21 }
  0x4a   : > { %6672 = vst [vmem:[#allocation47_spill] sm:$0xff] %v4923_v16  ;;  %v4933_v8 = vrot.slane %v4675_v12, %v4374_v19  ;;  %v1316_v42 = vsel %vm950_vm7, %v4886_v44, %v1315_v41  ;;  %v4938_v30 = vsel %vm950_vm7, %v1472_v23, %v1315_v41  ;;  %v1496_v50 = vsel %vm946_vm5, %v4424_v43, %v1495_v60 }
  0x4b   : > { %6674 = vst [vmem:[#allocation49_spill] sm:$0xff] %v4938_v30  ;;  %v4944_v18 = vrot.slane %v4695_v5, %v4374_v19  ;;  %4152 = vmatprep.subr.mxu1 %v6651_v7  ;;  %v1317_v13 = vsel %vm952_vm8, %v4890_v51, %v1316_v42  ;;  %v1497_v12 = vsel %vm948_vm6, %v1135_v10, %v1496_v50  ;;  %v3910_v5 = vld [vmem:[%s6507_s1 + $0x10] sm:$0xf] }
  0x4c   : > { %6673 = vst [vmem:[#allocation48_spill] sm:$0xff] %v4933_v8  ;;  %v4952_v48 = vrot.slane %v4685_v39, %v4374_v19  ;;  %v4956_v62 = vrot.slane %v4678_v27, %v4374_v19  ;;  %4066 = vmatmul.mubr.msk.f32.gmra.mxu1 %vm989_vm9, %v1317_v13  ;;  %v1498_v43 = vsel %vm950_vm7, %v1468_v58, %v1497_v12 }
  0x4d   : > { %6675 = vst [vmem:[#allocation50_spill] sm:$0xff] %v4944_v18  ;;  %v4965_v6 = vrot.slane %v4702_v28, %v4374_v19  ;;  %v4969_v10 = vrot.slane %v4698_v35, %v4374_v19  ;;  %v1318_v27 = vsel %vm940_vm2, %v4923_v16, %v4913_v32  ;;  %v1499_v20 = vsel %vm952_vm8, %v4429_v46, %v1498_v43 }
  0x4e   : > { %6676 = vst [vmem:[#allocation51_spill] sm:$0xff] %v4952_v48  ;;  %6677 = vst [vmem:[#allocation52_spill] sm:$0xff] %v4956_v62  ;;  %4068 = vmatprep.mubr.msk.f32.mxu1 %vm4301_vm1, %v6651_v7  ;;  %v1319_v26 = vsel %vm942_vm3, %v4933_v8, %v1318_v27  ;;  %v1500_v28 = vsel %vm940_vm2, %v4857_v55, %v4432_v47  ;;  %v4985_v35 = vrot.slane %v4757_v14, %v4374_v19 }
  0x4f   : > { %6678 = vst [vmem:[#allocation53_spill] sm:$0xff] %v4965_v6  ;;  %6679 = vst [vmem:[#allocation54_spill] sm:$0xff] %v4969_v10  ;;  %4086 = vmatmul.mubr.msk.f32.vlgmr.msra.gmra.mxu0 %vm989_vm9, %v1499_v20  ;;  %v1320_v25 = vsel %vm944_vm4, %v4944_v18, %v1319_v26  ;;  %v1501_v46 = vsel %vm942_vm3, %v4869_v1, %v1500_v28  ;;  %v4994_v58 = vrot.slane %v4773_v2, %v4374_v19 }
  0x50   : > { %6680 = vst [vmem:[#allocation55_spill] sm:$0xff] %v4985_v35  ;;  %v4998_v21 = vrot.slane %v4765_v4, %v4374_v19  ;;  %4130 = vmatpush3.msk.msra.mxu0 %vm1004_vm0, %v3910_v5  ;;  %4088 = vmatprep.mubr.msk.f32.mxu0 %vm4301_vm1, %v6651_v7  ;;  %v5005_v14 = vsel %vm946_vm5, %v4952_v48, %v1320_v25 }
  0x51   : > { %6681 = vst [vmem:[#allocation56_spill] sm:$0xff] %v4994_v58  ;;  %6683 = vst [vmem:[#allocation58_spill] sm:$0xff] %v5005_v14  ;;  %v1502_v41 = vsel %vm944_vm4, %v4875_v29, %v1501_v46  ;;  %v5011_v2 = vrot.slane %v4776_v31, %v4374_v19  ;;  %v1322_v60 = vsel %vm948_vm6, %v4956_v62, %v5005_v14  ;;  %4175 = vmatprep.subr.mxu0 %v6651_v7 }
  0x52   : > { %6682 = vst [vmem:[#allocation57_spill] sm:$0xff] %v4998_v21  ;;  %v1503_v42 = vsel %vm946_vm5, %v4879_v34, %v1502_v41  ;;  %v5020_v50 = vrot.slane %v4795_v38, %v4374_v19  ;;  %v5024_v13 = vrot.slane %v4786_v24, %v4374_v19  ;;  %v1323_v31 = vsel %vm950_vm7, %v4965_v6, %v1322_v60 }
  0x53   : > { %6684 = vst [vmem:[#allocation59_spill] sm:$0xff] %v5011_v2  ;;  %v1504_v12 = vsel %vm948_vm6, %v1472_v23, %v1503_v42  ;;  %v5032_v43 = vrot.slane %v4808_v36, %v4374_v19  ;;  %v1325_v38 = vsel %vm940_vm2, %v4985_v35, %v4748_v56  ;;  %v1324_v5 = vsel %vm952_vm8, %v4969_v10, %v1323_v31 }
  0x54   : > { %6685 = vst [vmem:[#allocation60_spill] sm:$0xff] %v5020_v50  ;;  %6686 = vst [vmem:[#allocation61_spill] sm:$0xff] %v5024_v13  ;;  %v1505_v24 = vsel %vm950_vm7, %v4890_v51, %v1504_v12  ;;  %v1326_v27 = vsel %vm942_vm3, %v4994_v58, %v1325_v38  ;;  %v400_v23 = vcombine.high %v4685_v39, %v4685_v39  ;;  %4069 = vmatmul.mubr.msk.f32.gmra.mxu1 %vm989_vm9, %v1324_v5 }
  0x55   : > { %6687 = vst [vmem:[#allocation62_spill] sm:$0xff] %v5032_v43  ;;  %v1506_v36 = vsel %vm952_vm8, %v4913_v32, %v1505_v24  ;;  %v5050_v20 = vsel %vm944_vm4, %v4998_v21, %v1326_v27  ;;  %v1507_v26 = vsel %vm940_vm2, %v4933_v8, %v4923_v16  ;;  %v5057_v28 = vrot.slane %v4441_v52, %v4374_v19 }
  0x56   : > { %6688 = vst [vmem:[#allocation63_spill] sm:$0xff] %v5050_v20  ;;  %4089 = vmatmul.mubr.msk.f32.gmra.mxu0 %vm989_vm9, %v1506_v36  ;;  %4071 = vmatprep.mubr.msk.f32.mxu1 %vm4301_vm1, %v6651_v7  ;;  %v1328_v39 = vsel %vm946_vm5, %v5011_v2, %v5050_v20  ;;  %v5066_v25 = vrot.slane %v400_v23, %v4374_v19  ;;  %v182_v2 = vld [vmem:[%s4352_s19 + $0x58] sm:$0xff] }
  0x57   : > { %6689 = vst [vmem:[#allocation64_spill] sm:$0xff] %v5057_v28  ;;  %v1508_v46 = vsel %vm942_vm3, %v4944_v18, %v1507_v26  ;;  %4091 = vmatprep.mubr.msk.f32.mxu0 %vm4301_vm1, %v6651_v7  ;;  %v1329_v52 = vsel %vm948_vm6, %v5020_v50, %v1328_v39  ;;  %v5078_v60 = vrot.slane %v4457_v59, %v4374_v19 }
  0x58   : > { %6690 = vst [vmem:[#allocation65_spill] sm:$0xff] %v5066_v25  ;;  %v1509_v41 = vsel %vm944_vm4, %v4952_v48, %v1508_v46  ;;  %v5082_v42 = vrot.slane %v4444_v53, %v4374_v19  ;;  %v1330_v31 = vsel %vm950_vm7, %v5024_v13, %v1329_v52  ;;  %v5090_v38 = vrot.slane %v4452_v57, %v4374_v19 }
  0x59   : > { %6691 = vst [vmem:[#allocation66_spill] sm:$0xff] %v5078_v60  ;;  %v1510_v12 = vsel %vm946_vm5, %v5066_v25, %v1509_v41  ;;  %v5094_v5 = vrot.slane %v4468_v0, %v4374_v19  ;;  %v1331_v59 = vsel %vm952_vm8, %v5032_v43, %v1330_v31  ;;  %v5102_v27 = vrot.slane %v4464_v63, %v4374_v19 }
  0x5a   : > { %6692 = vst [vmem:[#allocation67_spill] sm:$0xff] %v5082_v42  ;;  %6693 = vst [vmem:[#allocation68_spill] sm:$0xff] %v5090_v38  ;;  %v1511_v24 = vsel %vm948_vm6, %v4965_v6, %v1510_v12  ;;  %v5106_v23 = vrot.slane %v4490_v9, %v4374_v19  ;;  %4072 = vmatmul.mubr.msk.f32.gmra.mxu1 %vm989_vm9, %v1331_v59  ;;  %v5113_v0 = vrot.slane %v4460_v61, %v4374_v19 }
  0x5b   : > { %6694 = vst [vmem:[#allocation69_spill] sm:$0xff] %v5094_v5  ;;  %6695 = vst [vmem:[#allocation70_spill] sm:$0xff] %v5102_v27  ;;  %v1512_v57 = vsel %vm950_vm7, %v4969_v10, %v1511_v24  ;;  %v1332_v36 = vsel %vm940_vm2, %v5078_v60, %v5057_v28  ;;  %v468_v63 = vcombine.high %v4765_v4, %v4765_v4  ;;  %4074 = vmatprep.mubr.msk.f32.mxu1 %vm4301_vm1, %v6651_v7 }
  0x5c   : > { %6696 = vst [vmem:[#allocation71_spill] sm:$0xff] %v5106_v23  ;;  %6697 = vst [vmem:[#allocation72_spill] sm:$0xff] %v5113_v0  ;;  %v1513_v9 = vsel %vm952_vm8, %v4748_v56, %v1512_v57  ;;  %v5126_v26 = vsel %vm942_vm3, %v5082_v42, %v1332_v36  ;;  %v1514_v61 = vsel %vm940_vm2, %v4994_v58, %v4985_v35  ;;  %v6705_v57 = vld [vmem:[#allocation21_spill] sm:$0xff]  ;;  %v185_v58 = vld [vmem:[%s4352_s19 + $0x70] sm:$0xff] }
  0x5d   : > { %6698 = vst [vmem:[#allocation73_spill] sm:$0xff] %v5126_v26  ;;  %v5133_v39 = vrot.slane %v4607_v45, %v4374_v19  ;;  %4092 = vmatmul.mubr.msk.f32.gmra.mxu0 %vm989_vm9, %v1513_v9  ;;  %v1334_v4 = vsel %vm944_vm4, %v5090_v38, %v5126_v26  ;;  %v5140_v46 = vrot.slane %v468_v63, %v4374_v19  ;;  %v6708_v63 = vld [vmem:[#allocation14_spill] sm:$0xff]  ;;  %v173_v26 = vld [vmem:[%s4352_s19 + $0x10] sm:$0xff]  ;;  %v186_v56 = vld [vmem:[%s4352_s19 + $0x78] sm:$0xff] }
  0x5e   : > { %v1515_v52 = vsel %vm942_vm3, %v4998_v21, %v1514_v61  ;;  %v5146_v41 = vrot.slane %v4629_v54, %v4374_v19  ;;  %4094 = vmatprep.mubr.msk.f32.mxu0 %vm4301_vm1, %v6651_v7  ;;  %v1335_v45 = vsel %vm946_vm5, %v5094_v5, %v1334_v4  ;;  %v5154_v31 = vrot.slane %v4610_v49, %v4374_v19  ;;  %v6707_v49 = vld [vmem:[#allocation13_spill] sm:$0xff] }
  0x5f   : > { %6699 = vst [vmem:[#allocation74_spill] sm:$0xff] %v5133_v39  ;;  %6700 = vst [vmem:[#allocation75_spill] sm:$0xff] %v5140_v46  ;;  %v5158_v12 = vrot.slane %v4633_v37, %v4374_v19  ;;  %v5162_v59 = vrot.slane %v4618_v3, %v4374_v19  ;;  %v1336_v54 = vsel %vm948_vm6, %v5102_v27, %v1335_v45 }
  0x60   : > { %6701 = vst [vmem:[#allocation76_spill] sm:$0xff] %v5146_v41  ;;  %6702 = vst [vmem:[#allocation77_spill] sm:$0xff] %v5154_v31  ;;  %v1516_v24 = vsel %vm944_vm4, %v5140_v46, %v1515_v52  ;;  %v5170_v36 = vrot.slane %v6705_v57, %v4374_v19  ;;  %v5175_v9 = vsel %vm940_vm2, %v6708_v63, %v6707_v49 }
  0x61   : > { %6703 = vst [vmem:[#allocation78_spill] sm:$0xff] %v5158_v12  ;;  %6704 = vst [vmem:[#allocation79_spill] sm:$0xff] %v5162_v59  ;;  %v1337_v37 = vsel %vm950_vm7, %v5106_v23, %v1336_v54  ;;  %v1517_v3 = vsel %vm946_vm5, %v5020_v50, %v1516_v24  ;;  %v1340_v61 = vsel %vm942_vm3, %v5133_v39, %v5175_v9 }
  0x62   : > { %6706 = vst [vmem:[#allocation21_spill] sm:$0xff] %v5170_v36  ;;  %6709 = vst [vmem:[#allocation80_spill] sm:$0xff] %v5175_v9  ;;  %v536_v4 = vcombine.high %v4444_v53, %v4444_v53  ;;  %v1338_v52 = vsel %vm952_vm8, %v5113_v0, %v1337_v37  ;;  %v1518_v45 = vsel %vm948_vm6, %v5024_v13, %v1517_v3 }
  0x63   : > { %v1341_v54 = vsel %vm944_vm4, %v5146_v41, %v1340_v61  ;;  %v1521_v24 = vsel %vm940_vm2, %v5082_v42, %v5078_v60  ;;  %4075 = vmatmul.mubr.msk.f32.gmra.mxu1 %vm989_vm9, %v1338_v52  ;;  %v1519_v57 = vsel %vm950_vm7, %v5032_v43, %v1518_v45  ;;  %v1303_v3 = vrot.slane %v4739_v15, %v4374_v19  ;;  %v6711_v45 = vld [vmem:[#allocation5_spill] sm:$0xff] }
  0x64   : > { %v1342_v53 = vsel %vm946_vm5, %v5154_v31, %v1341_v54  ;;  %v5201_v37 = vrot.slane %v536_v4, %v4374_v19  ;;  %v1520_v61 = vsel %vm952_vm8, %v5057_v28, %v1519_v57  ;;  %4077 = vmatprep.mubr.msk.f32.mxu1 %vm4301_vm1, %v6651_v7  ;;  %v6712_v9 = vcombine.high %v6711_v45, %v6711_v45 }
  0x65   : > { %v1343_v52 = vsel %vm948_vm6, %v5158_v12, %v1342_v53  ;;  %v672_v4 = vcombine.high %v4739_v15, %v4739_v15  ;;  %4095 = vmatmul.mubr.msk.f32.gmra.mxu0 %vm989_vm9, %v1520_v61  ;;  %v5227_v53 = vsel %vm940_vm2, %v1303_v3, %v5170_v36  ;;  %v265_v46 = vcombine.high %v173_v26, %v173_v26 }
  0x66   : > { %6710 = vst [vmem:[#allocation81_spill] sm:$0xff] %v5201_v37  ;;  %v5215_v54 = vrot.slane %v6712_v9, %v4374_v19  ;;  %v1344_v57 = vsel %vm950_vm7, %v5162_v59, %v1343_v52  ;;  %v1522_v30 = vsel %vm942_vm3, %v5201_v37, %v1521_v24  ;;  %6714 = vst [vmem:[#allocation82_spill] sm:$0xff] %v5227_v53  ;;  %4097 = vmatprep.mubr.msk.f32.mxu0 %vm4301_vm1, %v6651_v7 }
  0x67   : > { %v5231_v9 = vcombine.high %v4705_v22, %v4705_v22  ;;  %v1345_v15 = vsel %vm952_vm8, %v5170_v36, %v1344_v57  ;;  %v1523_v61 = vsel %vm944_vm4, %v5094_v5, %v1522_v30  ;;  %v1492_v52 = vrot.slane %v672_v4, %v4374_v19  ;;  %v174_v30 = vld [vmem:[%s4352_s19 + $0x18] sm:$0xff] }
  0x68   : > { %6713 = vst [vmem:[#allocation5_spill] sm:$0xff] %v5215_v54  ;;  %v1528_v24 = vsel %vm940_vm2, %v5215_v54, %v6708_v63  ;;  %4078 = vmatmul.mubr.msk.f32.gmra.mxu1 %vm989_vm9, %v1345_v15  ;;  %v1524_v45 = vsel %vm946_vm5, %v5102_v27, %v1523_v61  ;;  %v6717_v61 = vld [vmem:[#allocation3_spill] sm:$0xff]  ;;  %v469_v62 = vcombine.high %v185_v58, %v185_v58 }
  0x69   : > { %6715 = vst [vmem:[#allocation83_spill] sm:$0xff] %v5231_v9  ;;  %v1529_v37 = vsel %vm942_vm3, %v5146_v41, %v1528_v24  ;;  %v5250_v57 = vrot.slane %v5231_v9, %v4374_v19  ;;  %v1525_v54 = vsel %vm948_vm6, %v5106_v23, %v1524_v45  ;;  %4080 = vmatprep.mubr.msk.f32.mxu1 %vm4301_vm1, %v6651_v7 }
  0x6a   : > { %v1530_v4 = vsel %vm944_vm4, %v5154_v31, %v1529_v37  ;;  %v3001_v15 = vsel %vm940_vm2, %v1492_v52, %v1303_v3  ;;  %v5261_v20 = vrot.slane %v173_v26, %v6717_v61  ;;  %v1526_v24 = vsel %vm950_vm7, %v5113_v0, %v1525_v54 }
  0x6b   : > { %6716 = vst [vmem:[#allocation84_spill] sm:$0xff] %v5250_v57  ;;  %v1531_v9 = vsel %vm946_vm5, %v5158_v12, %v1530_v4  ;;  %v5269_v45 = vsel %vm942_vm3, %v5250_v57, %v3001_v15  ;;  %v5273_v17 = vrot.slane %v265_v46, %v6717_v61  ;;  %v1527_v37 = vsel %vm952_vm8, %v6707_v49, %v1526_v24  ;;  %v181_v57 = vld [vmem:[%s4352_s19 + $0x50] sm:$0xff] }
  0x6c   : > { %6718 = vst [vmem:[#allocation3_spill] sm:$0xff] %v5269_v45  ;;  %v1532_v26 = vsel %vm948_vm6, %v5162_v59, %v1531_v9  ;;  %v5281_v54 = vcombine.high %v5261_v20, %v5261_v20  ;;  %v282_v4 = vcombine.high %v174_v30, %v174_v30  ;;  %4098 = vmatmul.mubr.msk.f32.gmra.mxu0 %vm989_vm9, %v1527_v37 }
  0x6d   : > { %4081 = vmatmul.mubr.msk.f32.gmra.mxu1 %vm989_vm9, %v1303_v3  ;;  %v1533_v46 = vsel %vm950_vm7, %v5170_v36, %v1532_v26  ;;  %v5289_v15 = vcombine.high %v5273_v17, %v5273_v17  ;;  %v5292_v9 = vrot.slane %v174_v30, %v6717_v61  ;;  %4100 = vmatprep.mubr.msk.f32.mxu0 %vm4301_vm1, %v6651_v7 }
  0x6e   : > { %v1534_v24 = vsel %vm952_vm8, %v1303_v3, %v1533_v46  ;;  %4108 = vmatprep.mubr.msk.f32.mxu1 %vm4301_vm1, %v6651_v7  ;;  %v5300_v37 = vrot.slane %v282_v4, %v6717_v61  ;;  %v333_v26 = vcombine.high %v177_v40, %v177_v40  ;;  %v5307_v45 = vrot.slane %v177_v40, %v6717_v61  ;;  %v178_v46 = vld [vmem:[%s4352_s19 + $0x38] sm:$0xff] }
  0x6f   : > { %v5304_v36 = vcombine.high %v5292_v9, %v5292_v9  ;;  %v1664_v30 = vrot.slane %v5261_v20, %v4374_v19  ;;  %v5313_v3 = vrot.slane %v5281_v54, %v4374_v19  ;;  %v5321_v4 = vrot.slane %v5273_v17, %v4374_v19 }
  0x70   : > { %v5317_v25 = vrot.slane %v333_v26, %v6717_v61  ;;  %v5325_v14 = vrot.slane %v5289_v15, %v4374_v19  ;;  %v5329_v40 = vrot.slane %v5292_v9, %v4374_v19  ;;  %4101 = vmatmul.mubr.msk.f32.gmra.mxu0 %vm989_vm9, %v1534_v24  ;;  %v5335_v53 = vcombine.high %v5307_v45, %v5307_v45 }
  0x71   : > { %v5339_v26 = vrot.slane %v5304_v36, %v4374_v19  ;;  %v5343_v59 = vrot.slane %v5300_v37, %v4374_v19  ;;  %v1692_v22 = vrot.slane %v5307_v45, %v4374_v19  ;;  %4103 = vmatprep.mubr.msk.f32.mxu0 %vm4301_vm1, %v6651_v7  ;;  %v1857_v24 = vsel %vm940_vm2, %v5313_v3, %v1664_v30 }
  0x72   : > { %v5353_v12 = vcombine.high %v5317_v25, %v5317_v25  ;;  %v350_v31 = vcombine.high %v178_v46, %v178_v46  ;;  %v5356_v41 = vrot.slane %v178_v46, %v6717_v61  ;;  %v1858_v23 = vsel %vm942_vm3, %v5321_v4, %v1857_v24 }
  0x73   : > { %v401_v39 = vcombine.high %v181_v57, %v181_v57  ;;  %v5361_v27 = vrot.slane %v181_v57, %v6717_v61  ;;  %v5365_v63 = vrot.slane %v5335_v53, %v4374_v19  ;;  %v1859_v30 = vsel %vm944_vm4, %v5325_v14, %v1858_v23 }
  0x74   : > { %v5370_v5 = vrot.slane %v350_v31, %v6717_v61  ;;  %v5374_v46 = vcombine.high %v5356_v41, %v5356_v41  ;;  %v5378_v24 = vrot.slane %v5317_v25, %v4374_v19  ;;  %4104 = vmatmul.mubr.msk.f32.gmra.mxu0 %vm989_vm9, %v1492_v52  ;;  %v1860_v57 = vsel %vm946_vm5, %v5329_v40, %v1859_v30 }
  0x75   : > { %v5384_v49 = vrot.slane %v401_v39, %v6717_v61  ;;  %v5388_v23 = vcombine.high %v5361_v27, %v5361_v27  ;;  %v5392_v31 = vrot.slane %v5353_v12, %v4374_v19  ;;  %v1861_v0 = vsel %vm948_vm6, %v5339_v26, %v1860_v57  ;;  %4131 = vmatprep.mubr.msk.f32.mxu0 %vm4301_vm1, %v6651_v7  ;;  %v3919_v57 = vld [vmem:[%s6507_s1 + $0x14] sm:$0xf] }
  0x76   : > { %v5400_v52 = vrot.slane %v5356_v41, %v4374_v19  ;;  %v5404_v39 = vrot.slane %v5374_v46, %v4374_v19  ;;  %v5408_v30 = vrot.slane %v5370_v5, %v4374_v19  ;;  %v1862_v38 = vsel %vm950_vm7, %v5343_v59, %v1861_v0 }
  0x77   : > { %v5417_v42 = vcombine.high %v5384_v49, %v5384_v49  ;;  %v1720_v13 = vrot.slane %v5361_v27, %v4374_v19  ;;  %v5423_v60 = vrot.slane %v5388_v23, %v4374_v19  ;;  %v1863_v50 = vsel %vm952_vm8, %v1692_v22, %v1862_v38 }
  0x78   : > { %v1864_v0 = vsel %vm940_vm2, %v5378_v24, %v5365_v63  ;;  %v2028_v28 = vrot.slane %v5261_v20, %v4361_v11  ;;  %v2032_v43 = vrot.slane %v5281_v54, %v4361_v11  ;;  %4109 = vmatmul.mubr.msk.f32.vlgmr.msra.gmra.mxu1 %vm989_vm9, %v1863_v50  ;;  %v2036_v6 = vrot.slane %v5273_v17, %v4361_v11 }
  0x79   : > { %v1865_v21 = vsel %vm942_vm3, %v5392_v31, %v1864_v0  ;;  %v2040_v22 = vrot.slane %v5289_v15, %v4361_v11  ;;  %v2044_v38 = vrot.slane %v5292_v9, %v4361_v11  ;;  %4153 = vmatpush3.msk.msra.mxu1 %vm1004_vm0, %v3919_v57  ;;  %4111 = vmatprep.mubr.msk.f32.mxu1 %vm4301_vm1, %v6651_v7 }
  0x7a   : > { %v1866_v50 = vsel %vm944_vm4, %v5400_v52, %v1865_v21  ;;  %v2048_v20 = vrot.slane %v5304_v36, %v4361_v11  ;;  %v2052_v17 = vrot.slane %v5300_v37, %v4361_v11  ;;  %v2056_v15 = vrot.slane %v5307_v45, %v4361_v11  ;;  %4198 = vmatprep.subr.mxu1 %v6651_v7 }
  0x7b   : > { %v1867_v54 = vsel %vm946_vm5, %v5404_v39, %v1866_v50  ;;  %v2221_v9 = vsel %vm940_vm2, %v2032_v43, %v2028_v28  ;;  %v418_v57 = vcombine.high %v182_v2, %v182_v2  ;;  %v5463_v36 = vrot.slane %v182_v2, %v6717_v61 }
  0x7c   : > { %v1868_v21 = vsel %vm948_vm6, %v5408_v30, %v1867_v54  ;;  %v2222_v0 = vsel %vm942_vm3, %v2036_v6, %v2221_v9  ;;  %v5471_v43 = vrot.slane %v185_v58, %v6717_v61  ;;  %v5481_v2 = vrot.slane %v469_v62, %v6717_v61  ;;  %v3928_v62 = vld [vmem:[%s6507_s1 + $0x18] sm:$0xf] }
  0x7d   : > { %v1869_v35 = vsel %vm950_vm7, %v1720_v13, %v1868_v21  ;;  %v2223_v50 = vsel %vm944_vm4, %v2040_v22, %v2222_v0  ;;  %v5468_v45 = vrot.slane %v418_v57, %v6717_v61  ;;  %v5478_v6 = vcombine.high %v5463_v36, %v5463_v36 }
  0x7e   : > { %v1870_v28 = vsel %vm952_vm8, %v5423_v60, %v1869_v35  ;;  %v2224_v54 = vsel %vm946_vm5, %v2044_v38, %v2223_v50  ;;  %v5487_v58 = vcombine.high %v5471_v43, %v5471_v43  ;;  %v5491_v35 = vrot.slane %v5384_v49, %v4374_v19 }
  0x7f   : > { %4112 = vmatmul.mubr.msk.f32.gmra.mxu1 %vm989_vm9, %v1870_v28  ;;  %v2225_v13 = vsel %vm948_vm6, %v2048_v20, %v2224_v54  ;;  %v5495_v22 = vrot.slane %v5417_v42, %v4374_v19  ;;  %v5505_v20 = vcombine.high %v5481_v2, %v5481_v2  ;;  %v5509_v9 = vrot.slane %v5463_v36, %v4374_v19 }
  0x80   : > { %6719 = vst [vmem:[#allocation85_spill] sm:$0xff] %v5491_v35  ;;  %v2226_v38 = vsel %vm950_vm7, %v2052_v17, %v2225_v13  ;;  %4114 = vmatprep.mubr.msk.f32.mxu1 %vm4301_vm1, %v6651_v7  ;;  %v5513_v57 = vrot.slane %v5478_v6, %v4374_v19  ;;  %v5518_v21 = vrot.slane %v5468_v45, %v4374_v19 }
  0x81   : > { %v2227_v17 = vsel %vm952_vm8, %v2056_v15, %v2226_v38  ;;  %v1748_v0 = vrot.slane %v5471_v43, %v4374_v19  ;;  %v5524_v50 = vrot.slane %v5487_v58, %v4374_v19  ;;  %v5529_v28 = vrot.slane %v5481_v2, %v4374_v19 }
  0x82   : > { %6720 = vst [vmem:[#allocation86_spill] sm:$0xff] %v5513_v57  ;;  %6721 = vst [vmem:[#allocation87_spill] sm:$0xff] %v5518_v21  ;;  %4132 = vmatmul.mubr.msk.f32.vlgmr.msra.gmra.mxu0 %vm989_vm9, %v2227_v17  ;;  %v5533_v15 = vrot.slane %v5505_v20, %v4374_v19  ;;  %v1871_v54 = vsel %vm940_vm2, %v5495_v22, %v5491_v35  ;;  %v2060_v17 = vrot.slane %v5335_v53, %v4361_v11 }
  0x83   : > { %6722 = vst [vmem:[#allocation88_spill] sm:$0xff] %v5524_v50  ;;  %6723 = vst [vmem:[#allocation89_spill] sm:$0xff] %v5529_v28  ;;  %4176 = vmatpush3.msk.msra.mxu0 %vm1004_vm0, %v3928_v62  ;;  %4134 = vmatprep.mubr.msk.f32.mxu0 %vm4301_vm1, %v6651_v7  ;;  %v1872_v38 = vsel %vm942_vm3, %v5509_v9, %v1871_v54  ;;  %v2064_v48 = vrot.slane %v5317_v25, %v4361_v11  ;;  %v189_v54 = vld [vmem:[%s4352_s19 + $0x90] sm:$0xff] }
  0x84   : > { %6724 = vst [vmem:[#allocation90_spill] sm:$0xff] %v5533_v15  ;;  %v1873_v10 = vsel %vm944_vm4, %v5513_v57, %v1872_v38  ;;  %v2068_v13 = vrot.slane %v5353_v12, %v4361_v11  ;;  %v2072_v62 = vrot.slane %v5356_v41, %v4361_v11  ;;  %v2076_v18 = vrot.slane %v5374_v46, %v4361_v11 }
  0x85   : > { %4221 = vmatprep.subr.mxu0 %v6651_v7  ;;  %v1874_v53 = vsel %vm946_vm5, %v5518_v21, %v1873_v10  ;;  %v2080_v25 = vrot.slane %v5370_v5, %v4361_v11  ;;  %v2084_v38 = vrot.slane %v5361_v27, %v4361_v11  ;;  %v2088_v12 = vrot.slane %v5388_v23, %v4361_v11 }
  0x86   : > { %v1875_v41 = vsel %vm948_vm6, %v1748_v0, %v1874_v53  ;;  %v2228_v8 = vsel %vm940_vm2, %v2064_v48, %v2060_v17  ;;  %v486_v46 = vcombine.high %v186_v56, %v186_v56  ;;  %v5571_v16 = vrot.slane %v186_v56, %v6717_v61 }
  0x87   : > { %v1876_v10 = vsel %vm950_vm7, %v5524_v50, %v1875_v41  ;;  %v2229_v32 = vsel %vm942_vm3, %v2068_v13, %v2228_v8  ;;  %v537_v51 = vcombine.high %v189_v54, %v189_v54  ;;  %v5577_v21 = vrot.slane %v189_v54, %v6717_v61 }
  0x88   : > { %v1877_v27 = vsel %vm952_vm8, %v5529_v28, %v1876_v10  ;;  %v2230_v23 = vsel %vm944_vm4, %v2072_v62, %v2229_v32  ;;  %v5583_v48 = vrot.slane %v486_v46, %v6717_v61  ;;  %v5587_v56 = vcombine.high %v5571_v16, %v5571_v16 }
  0x89   : > { %4115 = vmatmul.mubr.msk.f32.gmra.mxu1 %vm989_vm9, %v1877_v27  ;;  %v2231_v8 = vsel %vm946_vm5, %v2076_v18, %v2230_v23  ;;  %v5592_v0 = vrot.slane %v537_v51, %v6717_v61  ;;  %v5596_v13 = vcombine.high %v5577_v21, %v5577_v21  ;;  %v5600_v32 = vrot.slane %v5571_v16, %v4374_v19  ;;  %v190_v23 = vld [vmem:[%s4352_s19 + $0x98] sm:$0xff] }
  0x8a   : > { %6725 = vst [vmem:[#allocation91_spill] sm:$0xff] %v5583_v48  ;;  %v2232_v17 = vsel %vm948_vm6, %v2080_v25, %v2231_v8  ;;  %4117 = vmatprep.mubr.msk.f32.mxu1 %vm4301_vm1, %v6651_v7  ;;  %v5607_v18 = vrot.slane %v5587_v56, %v4374_v19  ;;  %v5611_v51 = vrot.slane %v5583_v48, %v4374_v19 }
  0x8b   : > { %6726 = vst [vmem:[#allocation92_spill] sm:$0xff] %v5600_v32  ;;  %v1776_v62 = vrot.slane %v5577_v21, %v4374_v19  ;;  %v2233_v54 = vsel %vm950_vm7, %v2084_v38, %v2232_v17  ;;  %v5618_v53 = vcombine.high %v5592_v0, %v5592_v0  ;;  %v5622_v25 = vrot.slane %v5596_v13, %v4374_v19 }
  0x8c   : > { %6727 = vst [vmem:[#allocation93_spill] sm:$0xff] %v5607_v18  ;;  %6728 = vst [vmem:[#allocation94_spill] sm:$0xff] %v5611_v51  ;;  %v5626_v41 = vrot.slane %v5592_v0, %v4374_v19  ;;  %v2234_v46 = vsel %vm952_vm8, %v2088_v12, %v2233_v54  ;;  %v1878_v10 = vsel %vm940_vm2, %v5600_v32, %v5533_v15  ;;  %v193_v54 = vld [vmem:[%s4352_s19 + $0xb0] sm:$0xff] }
  0x8d   : > { %6729 = vst [vmem:[#allocation95_spill] sm:$0xff] %v5622_v25  ;;  %v2092_v38 = vrot.slane %v5384_v49, %v4361_v11  ;;  %v2096_v27 = vrot.slane %v5417_v42, %v4361_v11  ;;  %4135 = vmatmul.mubr.msk.f32.gmra.mxu0 %vm989_vm9, %v2234_v46  ;;  %v5640_v8 = vrot.slane %v5618_v53, %v4374_v19 }
  0x8e   : > { %6730 = vst [vmem:[#allocation96_spill] sm:$0xff] %v5626_v41  ;;  %v1879_v12 = vsel %vm942_vm3, %v5607_v18, %v1878_v10  ;;  %v2100_v17 = vrot.slane %v5463_v36, %v4361_v11  ;;  %v2104_v49 = vrot.slane %v5478_v6, %v4361_v11  ;;  %4137 = vmatprep.mubr.msk.f32.mxu0 %vm4301_vm1, %v6651_v7  ;;  %v194_v18 = vld [vmem:[%s4352_s19 + $0xb8] sm:$0xff] }
  0x8f   : > { %6731 = vst [vmem:[#allocation97_spill] sm:$0xff] %v5640_v8  ;;  %v1880_v42 = vsel %vm944_vm4, %v5611_v51, %v1879_v12  ;;  %v2108_v46 = vrot.slane %v5468_v45, %v4361_v11  ;;  %v2112_v15 = vrot.slane %v5471_v43, %v4361_v11  ;;  %v2116_v10 = vrot.slane %v5487_v58, %v4361_v11 }
  0x90   : > { %v1881_v36 = vsel %vm946_vm5, %v1776_v62, %v1880_v42  ;;  %v2120_v6 = vrot.slane %v5481_v2, %v4361_v11  ;;  %v2235_v28 = vsel %vm940_vm2, %v2096_v27, %v2092_v38  ;;  %v554_v50 = vcombine.high %v190_v23, %v190_v23 }
  0x91   : > { %v1882_v12 = vsel %vm948_vm6, %v5622_v25, %v1881_v36  ;;  %v2236_v51 = vsel %vm942_vm3, %v2100_v17, %v2235_v28  ;;  %v5668_v32 = vrot.slane %v190_v23, %v6717_v61  ;;  %v605_v43 = vcombine.high %v193_v54, %v193_v54  ;;  %v197_v25 = vld [vmem:[%s4352_s19 + $0xd0] sm:$0xff] }
  0x92   : > { %v1883_v58 = vsel %vm950_vm7, %v5626_v41, %v1882_v12  ;;  %v2237_v62 = vsel %vm944_vm4, %v2104_v49, %v2236_v51  ;;  %v5674_v2 = vrot.slane %v554_v50, %v6717_v61  ;;  %v5677_v38 = vrot.slane %v193_v54, %v6717_v61 }
  0x93   : > { %v1884_v27 = vsel %vm952_vm8, %v5640_v8, %v1883_v58  ;;  %v2238_v28 = vsel %vm946_vm5, %v2108_v46, %v2237_v62  ;;  %v5684_v23 = vcombine.high %v5668_v32, %v5668_v32  ;;  %v5687_v17 = vrot.slane %v605_v43, %v6717_v61  ;;  %v198_v8 = vld [vmem:[%s4352_s19 + $0xd8] sm:$0xff] }
  0x94   : > { %4118 = vmatmul.mubr.msk.f32.gmra.mxu1 %vm989_vm9, %v1884_v27  ;;  %v2239_v50 = vsel %vm948_vm6, %v2112_v15, %v2238_v28  ;;  %v5693_v51 = vcombine.high %v5677_v38, %v5677_v38  ;;  %v622_v49 = vcombine.high %v194_v18, %v194_v18  ;;  %v5696_v54 = vrot.slane %v194_v18, %v6717_v61 }
  0x95   : > { %v2240_v42 = vsel %vm950_vm7, %v2116_v10, %v2239_v50  ;;  %4120 = vmatprep.mubr.msk.f32.mxu1 %vm4301_vm1, %v6651_v7  ;;  %v5703_v46 = vcombine.high %v5687_v17, %v5687_v17  ;;  %v5707_v15 = vrot.slane %v5668_v32, %v4374_v19  ;;  %v5711_v36 = vrot.slane %v5684_v23, %v4374_v19 }
  0x96   : > { %v2241_v18 = vsel %vm952_vm8, %v2120_v6, %v2240_v42  ;;  %v5715_v12 = vrot.slane %v622_v49, %v6717_v61  ;;  %v5719_v10 = vcombine.high %v5696_v54, %v5696_v54  ;;  %v5723_v43 = vrot.slane %v5674_v2, %v4374_v19 }
  0x97   : > { %6732 = vst [vmem:[#allocation98_spill] sm:$0xff] %v5707_v15  ;;  %6733 = vst [vmem:[#allocation99_spill] sm:$0xff] %v5711_v36  ;;  %4138 = vmatmul.mubr.msk.f32.gmra.mxu0 %vm989_vm9, %v2241_v18  ;;  %v1804_v58 = vrot.slane %v5677_v38, %v4374_v19  ;;  %v5730_v6 = vrot.slane %v5693_v51, %v4374_v19  ;;  %v5734_v62 = vrot.slane %v5687_v17, %v4374_v19 }
  0x98   : > { %6734 = vst [vmem:[#allocation100_spill] sm:$0xff] %v5723_v43  ;;  %v5738_v27 = vrot.slane %v5703_v46, %v4374_v19  ;;  %4140 = vmatprep.mubr.msk.f32.mxu0 %vm4301_vm1, %v6651_v7  ;;  %v5746_v50 = vrot.slane %v5696_v54, %v4374_v19  ;;  %v5750_v49 = vrot.slane %v5719_v10, %v4374_v19 }
  0x99   : > { %v5754_v42 = vrot.slane %v5715_v12, %v4374_v19  ;;  %v1885_v18 = vsel %vm940_vm2, %v5711_v36, %v5707_v15  ;;  %v2128_v41 = vrot.slane %v5571_v16, %v4361_v11  ;;  %v2132_v35 = vrot.slane %v5587_v56, %v4361_v11 }
  0x9a   : > { %6735 = vst [vmem:[#allocation101_spill] sm:$0xff] %v5746_v50  ;;  %6736 = vst [vmem:[#allocation102_spill] sm:$0xff] %v5750_v49  ;;  %v1886_v44 = vsel %vm942_vm3, %v5723_v43, %v1885_v18  ;;  %v2136_v57 = vrot.slane %v5583_v48, %v4361_v11  ;;  %v2140_v15 = vrot.slane %v5577_v21, %v4361_v11 }
  0x9b   : > { %v1887_v36 = vsel %vm944_vm4, %v1804_v58, %v1886_v44  ;;  %v2144_v28 = vrot.slane %v5596_v13, %v4361_v11  ;;  %v2148_v16 = vrot.slane %v5592_v0, %v4361_v11  ;;  %v2152_v18 = vrot.slane %v5618_v53, %v4361_v11 }
  0x9c   : > { %v1888_v56 = vsel %vm946_vm5, %v5730_v6, %v1887_v36  ;;  %v6737_v43 = vrot.slane %v5505_v20, %v4361_v11  ;;  %v673_v48 = vcombine.high %v197_v25, %v197_v25  ;;  %v680_v44 = vrot.slane %v197_v25, %v6717_v61 }
  0x9d   : > { %v1889_v13 = vsel %vm948_vm6, %v5734_v62, %v1888_v56  ;;  %v5793_v0 = vrot.slane %v198_v8, %v6717_v61  ;;  %v1892_v53 = vsel %vm940_vm2, %v5754_v42, %v5750_v49 }
  0x9e   : > { %v2242_v21 = vsel %vm940_vm2, %v2128_v41, %v6737_v43  ;;  %v1890_v20 = vsel %vm950_vm7, %v5738_v27, %v1889_v13  ;;  %v687_v36 = vrot.slane %v673_v48, %v6717_v61  ;;  %v688_v25 = vcombine.high %v680_v44, %v680_v44 }
  0x9f   : > { %v2243_v58 = vsel %vm942_vm3, %v2132_v35, %v2242_v21  ;;  %v1891_v43 = vsel %vm952_vm8, %v5746_v50, %v1890_v20  ;;  %v5807_v56 = vcombine.high %v5793_v0, %v5793_v0  ;;  %v1832_v21 = vrot.slane %v680_v44, %v4374_v19 }
  0xa0   : > { %v2244_v41 = vsel %vm944_vm4, %v2136_v57, %v2243_v58  ;;  %4121 = vmatmul.mubr.msk.f32.gmra.mxu1 %vm989_vm9, %v1891_v43  ;;  %v689_v49 = vcombine.high %v687_v36, %v687_v36  ;;  %v5813_v57 = vrot.slane %v688_v25, %v4374_v19  ;;  %v5816_v48 = vrot.slane %v687_v36, %v4374_v19 }
  0xa1   : > { %v2245_v35 = vsel %vm946_vm5, %v2140_v15, %v2244_v41  ;;  %4123 = vmatprep.mubr.msk.f32.mxu1 %vm4301_vm1, %v6651_v7  ;;  %v5823_v15 = vrot.slane %v5793_v0, %v4374_v19  ;;  %v5827_v20 = vrot.slane %v5807_v56, %v4374_v19  ;;  %v2160_v50 = vrot.slane %v5684_v23, %v4361_v11 }
  0xa2   : > { %v2246_v13 = vsel %vm948_vm6, %v2144_v28, %v2245_v35  ;;  %v1893_v28 = vsel %vm942_vm3, %v1832_v21, %v1892_v53  ;;  %v5832_v43 = vrot.slane %v689_v49, %v4374_v19  ;;  %v2156_v35 = vrot.slane %v5668_v32, %v4361_v11 }
  0xa3   : > { %v2247_v58 = vsel %vm950_vm7, %v2148_v16, %v2246_v13  ;;  %v1894_v16 = vsel %vm944_vm4, %v5813_v57, %v1893_v28  ;;  %v2168_v53 = vrot.slane %v5677_v38, %v4361_v11  ;;  %v2172_v21 = vrot.slane %v5693_v51, %v4361_v11 }
  0xa4   : > { %v2248_v41 = vsel %vm952_vm8, %v2152_v18, %v2247_v58  ;;  %6738 = vst [vmem:[#allocation103_spill] sm:$0xff] %v5832_v43  ;;  %v1895_v13 = vsel %vm946_vm5, %v5816_v48, %v1894_v16  ;;  %v2164_v18 = vrot.slane %v5674_v2, %v4361_v11  ;;  %v2176_v58 = vrot.slane %v5687_v17, %v4361_v11 }
  0xa5   : > { %4141 = vmatmul.mubr.msk.f32.gmra.mxu0 %vm989_vm9, %v2248_v41  ;;  %v1896_v32 = vsel %vm948_vm6, %v5832_v43, %v1895_v13  ;;  %v2180_v23 = vrot.slane %v5703_v46, %v4361_v11  ;;  %v2184_v38 = vrot.slane %v5696_v54, %v4361_v11  ;;  %v2249_v41 = vsel %vm940_vm2, %v2160_v50, %v2156_v35 }
  0xa6   : > { %4143 = vmatprep.mubr.msk.f32.mxu0 %vm4301_vm1, %v6651_v7  ;;  %v1897_v28 = vsel %vm950_vm7, %v5823_v15, %v1896_v32  ;;  %v690_v16 = vcombine.high %v198_v8, %v198_v8  ;;  %v2250_v51 = vsel %vm942_vm3, %v2164_v18, %v2249_v41  ;;  %v2196_v43 = vrot.slane %v680_v44, %v4361_v11 }
  0xa7   : > { %v1898_v13 = vsel %vm952_vm8, %v5827_v20, %v1897_v28  ;;  %v2200_v17 = vrot.slane %v688_v25, %v4361_v11  ;;  %v2251_v46 = vsel %vm944_vm4, %v2168_v53, %v2250_v51  ;;  %v2204_v54 = vrot.slane %v687_v36, %v4361_v11 }
  0xa8   : > { %4124 = vmatmul.mubr.msk.f32.gmra.mxu1 %vm989_vm9, %v1898_v13  ;;  %v5870_v32 = vrot.slane %v690_v16, %v6717_v61  ;;  %v2208_v8 = vrot.slane %v689_v49, %v4361_v11  ;;  %v2252_v50 = vsel %vm946_vm5, %v2172_v21, %v2251_v46  ;;  %v2212_v44 = vrot.slane %v5793_v0, %v4361_v11 }
  0xa9   : > { %4126 = vmatprep.mubr.msk.f32.mxu1 %vm4301_vm1, %v6651_v7  ;;  %v2216_v25 = vrot.slane %v5807_v56, %v4361_v11  ;;  %v6739_v35 = vrot.slane %v5719_v10, %v4361_v11  ;;  %v6740_v18 = vrot.slane %v5715_v12, %v4361_v11  ;;  %v2253_v49 = vsel %vm948_vm6, %v2176_v58, %v2252_v50 }
  0xaa   : > { %v5891_v53 = vrot.slane %v5870_v32, %v4374_v19  ;;  %v2220_v0 = vrot.slane %v5870_v32, %v4361_v11  ;;  %v2254_v56 = vsel %vm950_vm7, %v2180_v23, %v2253_v49  ;;  %v298_v28 = vcombine.high %v5300_v37, %v5300_v37 }
  0xab   : > { %v2256_v36 = vsel %vm940_vm2, %v6740_v18, %v6739_v35  ;;  %v2417_v58 = vsel %vm940_vm2, %v5321_v4, %v5313_v3  ;;  %v2255_v41 = vsel %vm952_vm8, %v2184_v38, %v2254_v56  ;;  %v366_v23 = vcombine.high %v5370_v5, %v5370_v5  ;;  %v6745_v18 = vld [vmem:[#allocation45_spill] sm:$0xff]  ;;  %v6748_v56 = vld [vmem:[#allocation91_spill] sm:$0xff] }
  0xac   : > { %v2257_v21 = vsel %vm942_vm3, %v2196_v43, %v2256_v36  ;;  %4127 = vmatmul.mubr.msk.f32.gmra.mxu1 %vm989_vm9, %v5891_v53  ;;  %v2418_v16 = vsel %vm942_vm3, %v5325_v14, %v2417_v58  ;;  %4144 = vmatmul.mubr.msk.f32.gmra.mxu0 %vm989_vm9, %v2255_v41  ;;  %v2392_v3 = vrot.slane %v298_v28, %v4374_v19  ;;  %v6746_v36 = vld [vmem:[#allocation46_spill] sm:$0xff]  ;;  %v6749_v28 = vld [vmem:[#allocation92_spill] sm:$0xff]  ;;  %v6750_v58 = vld [vmem:[#allocation93_spill] sm:$0xff] }
  0xad   : > { %v2258_v10 = vsel %vm944_vm4, %v2200_v17, %v2257_v21  ;;  %4154 = vmatprep.mubr.msk.f32.mxu1 %vm4301_vm1, %v6651_v7  ;;  %v2419_v4 = vsel %vm944_vm4, %v5329_v40, %v2418_v16  ;;  %4146 = vmatprep.mubr.msk.f32.mxu0 %vm4301_vm1, %v6651_v7  ;;  %v2396_v38 = vrot.slane %v366_v23, %v4374_v19  ;;  %v6752_v16 = vld [vmem:[#allocation48_spill] sm:$0xff] }
  0xae   : > { %v2259_v43 = vsel %vm946_vm5, %v2204_v54, %v2258_v10  ;;  %v2420_v5 = vsel %vm946_vm5, %v5339_v26, %v2419_v4  ;;  %v2424_v13 = vsel %vm940_vm2, %v5392_v31, %v5378_v24  ;;  %v2614_v46 = vsel %vm942_vm3, %v4432_v47, %v4865_v33  ;;  %v3937_v54 = vld [vmem:[%s6507_s1 + $0x1c] sm:$0xf]  ;;  %v3946_v4 = vld [vmem:[%s6507_s1 + $0x20] sm:$0xf] }
  0xaf   : > { %v2260_v37 = vsel %vm948_vm6, %v2208_v8, %v2259_v43  ;;  %v2421_v17 = vsel %vm948_vm6, %v5343_v59, %v2420_v5  ;;  %v2425_v40 = vsel %vm942_vm3, %v5400_v52, %v2424_v13  ;;  %v2615_v31 = vsel %vm944_vm4, %v4857_v55, %v2614_v46  ;;  %v6742_v8 = vld [vmem:[#allocation85_spill] sm:$0xff]  ;;  %v6751_v43 = vld [vmem:[#allocation88_spill] sm:$0xff] }
  0xb0   : > { %v2261_v14 = vsel %vm950_vm7, %v2212_v44, %v2260_v37  ;;  %v2422_v26 = vsel %vm950_vm7, %v2392_v3, %v2421_v17  ;;  %v2426_v24 = vsel %vm944_vm4, %v5404_v39, %v2425_v40  ;;  %v434_v59 = vcombine.high %v5468_v45, %v5468_v45  ;;  %v6753_v37 = vld [vmem:[#allocation94_spill] sm:$0xff] }
  0xb1   : > { %v2262_v51 = vsel %vm952_vm8, %v2216_v25, %v2261_v14  ;;  %v2423_v47 = vsel %vm952_vm8, %v5365_v63, %v2422_v26  ;;  %v2427_v33 = vsel %vm946_vm5, %v5408_v30, %v2426_v24  ;;  %v2616_v52 = vsel %vm946_vm5, %v4869_v1, %v2615_v31  ;;  %v6744_v25 = vld [vmem:[#allocation87_spill] sm:$0xff]  ;;  %v6754_v14 = vld [vmem:[#allocation89_spill] sm:$0xff]  ;;  %v6756_v17 = vld [vmem:[#allocation54_spill] sm:$0xff] }
  0xb2   : > { %4147 = vmatmul.mubr.msk.f32.gmra.mxu0 %vm989_vm9, %v2262_v51  ;;  %v2431_v39 = vsel %vm940_vm2, %v5509_v9, %v5495_v22  ;;  %4155 = vmatmul.mubr.msk.f32.vlgmr.msra.gmra.mxu1 %vm989_vm9, %v2423_v47  ;;  %v2428_v55 = vsel %vm948_vm6, %v2396_v38, %v2427_v33  ;;  %v2617_v63 = vsel %vm948_vm6, %v4875_v29, %v2616_v52  ;;  %v6741_v22 = vld [vmem:[#allocation86_spill] sm:$0xff]  ;;  %v6743_v29 = vld [vmem:[#allocation44_spill] sm:$0xff]  ;;  %v6759_v24 = vld [vmem:[#allocation51_spill] sm:$0xff] }
  0xb3   : > { %4149 = vmatprep.mubr.msk.f32.mxu0 %vm4301_vm1, %v6651_v7  ;;  %v2400_v45 = vrot.slane %v434_v59, %v4374_v19  ;;  %4199 = vmatpush3.msk.msra.mxu1 %vm1004_vm0, %v3937_v54  ;;  %v2429_v1 = vsel %vm950_vm7, %v5423_v60, %v2428_v55  ;;  %v2618_v30 = vsel %vm950_vm7, %v4879_v34, %v2617_v63  ;;  %v6747_v60 = vld [vmem:[#allocation47_spill] sm:$0xff]  ;;  %v6755_v38 = vld [vmem:[#allocation50_spill] sm:$0xff]  ;;  %v6761_v52 = vld [vmem:[#allocation52_spill] sm:$0xff] }
  0xb4   : > { %4157 = vmatprep.mubr.msk.f32.mxu1 %vm4301_vm1, %v6651_v7  ;;  %v2432_v9 = vsel %vm942_vm3, %v6741_v22, %v2431_v39  ;;  %v2430_v50 = vsel %vm952_vm8, %v6742_v8, %v2429_v1  ;;  %v2619_v44 = vsel %vm952_vm8, %v6743_v29, %v2618_v30  ;;  %v2620_v49 = vsel %vm940_vm2, %v6746_v36, %v6745_v18  ;;  %v6757_v40 = vld [vmem:[#allocation34_spill] sm:$0xff]  ;;  %v6760_v59 = vld [vmem:[#allocation55_spill] sm:$0xff]  ;;  %v6762_v63 = vld [vmem:[#allocation56_spill] sm:$0xff] }
  0xb5   : > { %v2433_v35 = vsel %vm944_vm4, %v6744_v25, %v2432_v9  ;;  %v2621_v21 = vsel %vm942_vm3, %v6747_v60, %v2620_v49  ;;  %v502_v10 = vcombine.high %v6748_v56, %v6748_v56  ;;  %v2438_v41 = vsel %vm940_vm2, %v6750_v58, %v6749_v28  ;;  %v6758_v26 = vld [vmem:[#allocation90_spill] sm:$0xff]  ;;  %v6763_v1 = vld [vmem:[#allocation99_spill] sm:$0xff]  ;;  %v6764_v30 = vld [vmem:[#allocation100_spill] sm:$0xff] }
  0xb6   : > { %4150 = vmatmul.mubr.msk.f32.gmra.mxu0 %vm989_vm9, %v2220_v0  ;;  %v2434_v34 = vsel %vm946_vm5, %v2400_v45, %v2433_v35  ;;  %4158 = vmatmul.mubr.msk.f32.gmra.mxu1 %vm989_vm9, %v2430_v50  ;;  %v2622_v23 = vsel %vm944_vm4, %v6752_v16, %v2621_v21  ;;  %v2439_v3 = vsel %vm942_vm3, %v6753_v37, %v2438_v41  ;;  %v6766_v8 = vld [vmem:[#allocation95_spill] sm:$0xff]  ;;  %v6767_v29 = vld [vmem:[#allocation57_spill] sm:$0xff]  ;;  %v6768_v25 = vld [vmem:[#allocation96_spill] sm:$0xff] }
  0xb7   : > { %4177 = vmatprep.mubr.msk.f32.mxu0 %vm4301_vm1, %v6651_v7  ;;  %v2435_v0 = vsel %vm948_vm6, %v6751_v43, %v2434_v34  ;;  %4160 = vmatprep.mubr.msk.f32.mxu1 %vm4301_vm1, %v6651_v7  ;;  %v2623_v13 = vsel %vm946_vm5, %v6755_v38, %v2622_v23  ;;  %v2404_v51 = vrot.slane %v502_v10, %v4374_v19  ;;  %v6769_v36 = vld [vmem:[#allocation59_spill] sm:$0xff]  ;;  %v6770_v60 = vld [vmem:[#allocation62_spill] sm:$0xff]  ;;  %v6771_v21 = vld [vmem:[#allocation64_spill] sm:$0xff] }
  0xb8   : > { %v2436_v5 = vsel %vm950_vm7, %v6754_v14, %v2435_v0  ;;  %v2627_v46 = vsel %vm940_vm2, %v6757_v40, %v6756_v17  ;;  %v2624_v31 = vsel %vm948_vm6, %v6759_v24, %v2623_v13  ;;  %v570_v33 = vcombine.high %v5674_v2, %v5674_v2  ;;  %v6765_v2 = vld [vmem:[#allocation53_spill] sm:$0xff]  ;;  %v6773_v58 = vld [vmem:[#allocation60_spill] sm:$0xff]  ;;  %v6774_v43 = vld [vmem:[#allocation66_spill] sm:$0xff] }
  0xb9   : > { %v2437_v54 = vsel %vm952_vm8, %v6758_v26, %v2436_v5  ;;  %v2628_v47 = vsel %vm942_vm3, %v6760_v59, %v2627_v46  ;;  %v2625_v39 = vsel %vm950_vm7, %v6761_v52, %v2624_v31  ;;  %v2440_v55 = vsel %vm944_vm4, %v2404_v51, %v2439_v3  ;;  %v6772_v10 = vld [vmem:[#allocation97_spill] sm:$0xff]  ;;  %v6776_v37 = vld [vmem:[#allocation98_spill] sm:$0xff]  ;;  %v6778_v38 = vld [vmem:[#allocation67_spill] sm:$0xff] }
  0xba   : > { %4178 = vmatmul.mubr.msk.f32.vlgmr.msra.gmra.mxu0 %vm989_vm9, %v2619_v44  ;;  %v2629_v45 = vsel %vm944_vm4, %v6762_v63, %v2628_v47  ;;  %v2445_v22 = vsel %vm940_vm2, %v6764_v30, %v6763_v1  ;;  %v2626_v9 = vsel %vm952_vm8, %v6765_v2, %v2625_v39  ;;  %v2441_v50 = vsel %vm946_vm5, %v6766_v8, %v2440_v55  ;;  %v6779_v51 = vld [vmem:[#allocation68_spill] sm:$0xff]  ;;  %v6782_v59 = vld [vmem:[#allocation69_spill] sm:$0xff]  ;;  %v6784_v39 = vld [vmem:[#allocation70_spill] sm:$0xff] }
  0xbb   : > { %4222 = vmatpush3.msk.msra.mxu0 %vm1004_vm0, %v3946_v4  ;;  %4180 = vmatprep.mubr.msk.f32.mxu0 %vm4301_vm1, %v6651_v7  ;;  %v2630_v44 = vsel %vm946_vm5, %v6767_v29, %v2629_v45  ;;  %v2442_v35 = vsel %vm948_vm6, %v6768_v25, %v2441_v50  ;;  %v2408_v34 = vrot.slane %v570_v33, %v4374_v19  ;;  %v6777_v4 = vld [vmem:[#allocation61_spill] sm:$0xff]  ;;  %v6780_v26 = vld [vmem:[#allocation72_spill] sm:$0xff]  ;;  %v6783_v33 = vld [vmem:[#allocation14_spill] sm:$0xff] }
  0xbc   : > { %4161 = vmatmul.mubr.msk.f32.gmra.mxu1 %vm989_vm9, %v2437_v54  ;;  %v2631_v49 = vsel %vm948_vm6, %v6769_v36, %v2630_v44  ;;  %v2634_v56 = vsel %vm940_vm2, %v6771_v21, %v6770_v60  ;;  %v2443_v28 = vsel %vm950_vm7, %v6772_v10, %v2442_v35  ;;  %v6775_v16 = vcombine.high %v5715_v12, %v5715_v12  ;;  %v6781_v54 = vld [vmem:[#allocation13_spill] sm:$0xff]  ;;  %v6785_v63 = vld [vmem:[#allocation74_spill] sm:$0xff]  ;;  %v6789_v50 = vld [vmem:[#allocation76_spill] sm:$0xff] }
  0xbd   : > { %4163 = vmatprep.mubr.msk.f32.mxu1 %vm4301_vm1, %v6651_v7  ;;  %v2632_v41 = vsel %vm950_vm7, %v6773_v58, %v2631_v49  ;;  %v2635_v0 = vsel %vm942_vm3, %v6774_v43, %v2634_v56  ;;  %v2444_v3 = vsel %vm952_vm8, %v6776_v37, %v2443_v28  ;;  %v2446_v5 = vsel %vm942_vm3, %v2408_v34, %v2445_v22  ;;  %v6786_v1 = vld [vmem:[#allocation101_spill] sm:$0xff]  ;;  %v6787_v22 = vld [vmem:[#allocation71_spill] sm:$0xff]  ;;  %v6792_v21 = vld [vmem:[#allocation78_spill] sm:$0xff] }
  0xbe   : > { %v2412_v23 = vrot.slane %v6775_v16, %v4374_v19  ;;  %4181 = vmatmul.mubr.msk.f32.gmra.mxu0 %vm989_vm9, %v2626_v9  ;;  %v2633_v14 = vsel %vm952_vm8, %v6777_v4, %v2632_v41  ;;  %v2636_v13 = vsel %vm944_vm4, %v6778_v38, %v2635_v0  ;;  %v2447_v12 = vsel %vm944_vm4, %v5730_v6, %v2446_v5  ;;  %v6791_v35 = vld [vmem:[#allocation77_spill] sm:$0xff]  ;;  %v4289_v10 = vld [vmem:[%s4352_s19 + $0xe0] sm:$0xff]  ;;  %v6796_v5 = vld [vmem:[#allocation4_spill] sm:$0xff] }
  0xbf   : > { %4183 = vmatprep.mubr.msk.f32.mxu0 %vm4301_vm1, %v6651_v7  ;;  %v2637_v40 = vsel %vm946_vm5, %v6779_v51, %v2636_v13  ;;  %v2641_v24 = vsel %vm940_vm2, %v6781_v54, %v6780_v26  ;;  %v2448_v31 = vsel %vm946_vm5, %v5734_v62, %v2447_v12  ;;  %v706_v49 = vcombine.high %v5870_v32, %v5870_v32  ;;  %v6793_v32 = vld [vmem:[#allocation28_spill] sm:$0xff]  ;;  %v6799_v51 = vld [vmem:[#allocation27_spill] sm:$0xff] }
  0xc0   : > { %v2452_v46 = vsel %vm940_vm2, %v2412_v23, %v5754_v42  ;;  %4164 = vmatmul.mubr.msk.f32.gmra.mxu1 %vm989_vm9, %v2444_v3  ;;  %v2638_v47 = vsel %vm948_vm6, %v6782_v59, %v2637_v40  ;;  %v2642_v52 = vsel %vm942_vm3, %v6783_v33, %v2641_v24  ;;  %v2449_v42 = vsel %vm948_vm6, %v5738_v27, %v2448_v31  ;;  %v6788_v27 = vld [vmem:[#allocation103_spill] sm:$0xff]  ;;  %v6797_v38 = vld [vmem:[#allocation16_spill] sm:$0xff] }
  0xc1   : > { %v2453_v6 = vsel %vm942_vm3, %v5813_v57, %v2452_v46  ;;  %4166 = vmatprep.mubr.msk.f32.mxu1 %vm4301_vm1, %v6651_v7  ;;  %v2639_v55 = vsel %vm950_vm7, %v6784_v39, %v2638_v47  ;;  %v2643_v45 = vsel %vm944_vm4, %v6785_v63, %v2642_v52  ;;  %v200_v57 = vld [vmem:[%s4352_s19 + $0xe8] sm:$0xff]  ;;  %v2450_v30 = vsel %vm950_vm7, %v6786_v1, %v2449_v42  ;;  %v6798_v12 = vld [vmem:[#allocation20_spill] sm:$0xff]  ;;  %v6802_v42 = vld [vmem:[#allocation29_spill] sm:$0xff] }
  0xc2   : > { %v2454_v62 = vsel %vm944_vm4, %v5816_v48, %v2453_v6  ;;  %4184 = vmatmul.mubr.msk.f32.gmra.mxu0 %vm989_vm9, %v2633_v14  ;;  %v2640_v9 = vsel %vm952_vm8, %v6787_v22, %v2639_v55  ;;  %v2644_v29 = vsel %vm946_vm5, %v6789_v50, %v2643_v45  ;;  %v6790_v48 = vld [vmem:[#allocation102_spill] sm:$0xff]  ;;  %v707_v28 = vcombine.high %v4289_v10, %v4289_v10  ;;  %v6800_v31 = vld [vmem:[#allocation84_spill] sm:$0xff]  ;;  %v6801_v33 = vld [vmem:[#allocation19_spill] sm:$0xff] }
  0xc3   : > { %v2455_v8 = vsel %vm946_vm5, %v6788_v27, %v2454_v62  ;;  %4186 = vmatprep.mubr.msk.f32.mxu0 %vm4301_vm1, %v6651_v7  ;;  %v2451_v44 = vsel %vm952_vm8, %v6790_v48, %v2450_v30  ;;  %v2645_v36 = vsel %vm948_vm6, %v6791_v35, %v2644_v29  ;;  %v6123_v41 = vrot.slane %v200_v57, %v6717_v61  ;;  %v6803_v62 = vld [vmem:[#allocation35_spill] sm:$0xff]  ;;  %v6804_v63 = vld [vmem:[#allocation37_spill] sm:$0xff]  ;;  %v6806_v27 = vld [vmem:[#allocation32_spill] sm:$0xff] }
  0xc4   : > { %v2456_v25 = vsel %vm948_vm6, %v5823_v15, %v2455_v8  ;;  %4167 = vmatmul.mubr.msk.f32.gmra.mxu1 %vm989_vm9, %v2451_v44  ;;  %v2646_v56 = vsel %vm950_vm7, %v6792_v21, %v2645_v36  ;;  %v2588_v43 = vrot.slane %v6793_v32, %v4374_v19  ;;  %v2416_v16 = vrot.slane %v706_v49, %v4374_v19  ;;  %v6805_v30 = vld [vmem:[#allocation17_spill] sm:$0xff]  ;;  %v6807_v48 = vld [vmem:[#allocation30_spill] sm:$0xff] }
  0xc5   : > { %v2457_v34 = vsel %vm950_vm7, %v5827_v20, %v2456_v25  ;;  %4169 = vmatprep.mubr.msk.f32.mxu1 %vm4301_vm1, %v6651_v7  ;;  %v6794_v20 = vld [vmem:[#allocation79_spill] sm:$0xff]  ;;  %v6136_v23 = vrot.slane %v707_v28, %v6717_v61  ;;  %v6140_v37 = vcombine.high %v6123_v41, %v6123_v41  ;;  %v724_v14 = vcombine.high %v200_v57, %v200_v57  ;;  %v6808_v25 = vld [vmem:[#allocation38_spill] sm:$0xff] }
  0xc6   : > { %v2458_v15 = vsel %vm952_vm8, %v5891_v53, %v2457_v34  ;;  %4187 = vmatmul.mubr.msk.f32.gmra.mxu0 %vm989_vm9, %v2640_v9  ;;  %v2647_v0 = vsel %vm952_vm8, %v6794_v20, %v2646_v56  ;;  %v6795_v53 = vld [vmem:[#allocation82_spill] sm:$0xff]  ;;  %v2812_v13 = vsel %vm946_vm5, %v6797_v38, %v6796_v5  ;;  %v2817_v40 = vsel %vm942_vm3, %v6799_v51, %v6798_v12  ;;  %v6809_v34 = vld [vmem:[#allocation39_spill] sm:$0xff] }
  0xc7   : > { %4189 = vmatprep.mubr.msk.f32.mxu0 %vm4301_vm1, %v6651_v7  ;;  %v2649_v3 = vsel %vm942_vm3, %v2588_v43, %v6795_v53  ;;  %v6155_v46 = vcombine.high %v6136_v23, %v6136_v23  ;;  %v2596_v54 = vrot.slane %v6136_v23, %v4374_v19  ;;  %v6161_v24 = vrot.slane %v6123_v41, %v4374_v19  ;;  %v6812_v43 = vld [vmem:[#allocation58_spill] sm:$0xff]  ;;  %v6815_v5 = vld [vmem:[#allocation43_spill] sm:$0xff] }
  0xc8   : > { %4170 = vmatmul.mubr.msk.f32.gmra.mxu1 %vm989_vm9, %v2458_v15  ;;  %v2650_v47 = vsel %vm944_vm4, %v6800_v31, %v2649_v3  ;;  %v6169_v6 = vrot.slane %v6140_v37, %v4374_v19  ;;  %v2813_v52 = vsel %vm948_vm6, %v6801_v33, %v2812_v13  ;;  %v2818_v55 = vsel %vm944_vm4, %v6802_v42, %v2817_v40  ;;  %v6811_v15 = vld [vmem:[#allocation40_spill] sm:$0xff]  ;;  %v6814_v3 = vld [vmem:[#allocation31_spill] sm:$0xff]  ;;  %v6816_v38 = vld [vmem:[#allocation6_spill] sm:$0xff] }
  0xc9   : > { %4172 = vmatprep.mubr.msk.f32.mxu1 %vm4301_vm1, %v6651_v7  ;;  %v2824_v45 = vsel %vm942_vm3, %v6804_v63, %v6803_v62  ;;  %v2600_v57 = vrot.slane %v6155_v46, %v4374_v19  ;;  %v2651_v1 = vsel %vm946_vm5, %v2596_v54, %v2650_v47  ;;  %v2814_v9 = vsel %vm950_vm7, %v6805_v30, %v2813_v52  ;;  %v6817_v51 = vld [vmem:[#allocation7_spill] sm:$0xff]  ;;  %v6819_v47 = vld [vmem:[#allocation12_spill] sm:$0xff]  ;;  %v6820_v52 = vld [vmem:[#allocation42_spill] sm:$0xff] }
  0xca   : > { %4190 = vmatmul.mubr.msk.f32.gmra.mxu0 %vm989_vm9, %v2647_v0  ;;  %v2819_v8 = vsel %vm946_vm5, %v6806_v27, %v2818_v55  ;;  %v6189_v29 = vrot.slane %v724_v14, %v6717_v61  ;;  %v2825_v36 = vsel %vm944_vm4, %v6808_v25, %v2824_v45  ;;  %v6810_v61 = vld [vmem:[#allocation18_spill] sm:$0xff]  ;;  %v6813_v0 = vld [vmem:[#allocation65_spill] sm:$0xff]  ;;  %v2831_v13 = vsel %vm942_vm3, %v6816_v38, %v6815_v5  ;;  %v6818_v31 = vld [vmem:[#allocation15_spill] sm:$0xff] }
  0xcb   : > { %4192 = vmatprep.mubr.msk.f32.mxu0 %vm4301_vm1, %v6651_v7  ;;  %v2820_v44 = vsel %vm948_vm6, %v6807_v48, %v2819_v8  ;;  %v2652_v49 = vsel %vm948_vm6, %v2600_v57, %v2651_v1  ;;  %v2826_v56 = vsel %vm946_vm5, %v6809_v34, %v2825_v36  ;;  %v2815_v28 = vsel %vm952_vm8, %v6810_v61, %v2814_v9  ;;  %v6821_v62 = vld [vmem:[#allocation8_spill] sm:$0xff]  ;;  %v6822_v45 = vld [vmem:[#allocation33_spill] sm:$0xff]  ;;  %v6823_v30 = vld [vmem:[#allocation22_spill] sm:$0xff] }
  0xcc   : > { %4173 = vmatmul.mubr.msk.f32.gmra.mxu1 %vm989_vm9, %v2416_v16  ;;  %v2653_v10 = vsel %vm950_vm7, %v6161_v24, %v2652_v49  ;;  %v2827_v32 = vsel %vm948_vm6, %v6811_v15, %v2826_v56  ;;  %v2983_v16 = vsel %vm948_vm6, %v6813_v0, %v6812_v43  ;;  %v2821_v14 = vsel %vm950_vm7, %v6814_v3, %v2820_v44  ;;  %v6824_v27 = vld [vmem:[#allocation9_spill] sm:$0xff]  ;;  %v6825_v48 = vld [vmem:[#allocation63_spill] sm:$0xff]  ;;  %v6834_v38 = vld [vmem:[#allocation36_spill] sm:$0xff] }
  0xcd   : > { %4200 = vmatprep.mubr.msk.f32.mxu1 %vm4301_vm1, %v6651_v7  ;;  %v2654_v53 = vsel %vm952_vm8, %v6169_v6, %v2653_v10  ;;  %v2612_v12 = vrot.slane %v6189_v29, %v4374_v19  ;;  %v2832_v40 = vsel %vm944_vm4, %v6817_v51, %v2831_v13  ;;  %v2838_v33 = vsel %vm942_vm3, %v6819_v47, %v6818_v31  ;;  %v6826_v44 = vld [vmem:[#allocation75_spill] sm:$0xff]  ;;  %v6828_v49 = vld [vmem:[#allocation41_spill] sm:$0xff]  ;;  %v6835_v13 = vld [vmem:[#allocation80_spill] sm:$0xff] }
  0xce   : > { %4193 = vmatmul.mubr.msk.f32.gmra.mxu0 %vm989_vm9, %v2654_v53  ;;  %v2828_v42 = vsel %vm950_vm7, %v6820_v52, %v2827_v32  ;;  %v2984_v55 = vsel %vm950_vm7, %v6765_v2, %v2983_v16  ;;  %v2833_v63 = vsel %vm946_vm5, %v6821_v62, %v2832_v40  ;;  %v2822_v1 = vsel %vm952_vm8, %v6822_v45, %v2821_v14  ;;  %v6827_v2 = vld [vmem:[#allocation49_spill] sm:$0xff]  ;;  %v6829_v10 = vld [vmem:[#allocation83_spill] sm:$0xff] }
  0xcf   : > { %4195 = vmatprep.mubr.msk.f32.mxu0 %vm4301_vm1, %v6651_v7  ;;  %v2839_v9 = vsel %vm944_vm4, %v6823_v30, %v2838_v33  ;;  %v2834_v8 = vsel %vm948_vm6, %v6824_v27, %v2833_v63  ;;  %v2986_v25 = vsel %vm946_vm5, %v6826_v44, %v6825_v48  ;;  %v2982_v36 = vsel %vm952_vm8, %v6745_v18, %v6827_v2  ;;  %v6831_v32 = vld [vmem:[#allocation73_spill] sm:$0xff]  ;;  %v6837_v31 = vld [vmem:[#allocation3_spill] sm:$0xff] }
  0xd0   : > { %4201 = vmatmul.mubr.msk.f32.vlgmr.msra.gmra.mxu1 %vm989_vm9, %v2815_v28  ;;  %v2829_v34 = vsel %vm952_vm8, %v6828_v49, %v2828_v42  ;;  %v2985_v56 = vsel %vm952_vm8, %v6756_v17, %v2984_v55  ;;  %v2788_v61 = vrot.slane %v6829_v10, %v4361_v11  ;;  %v6830_v28 = vld [vmem:[#allocation24_spill] sm:$0xff]  ;;  %v6832_v43 = vld [vmem:[#allocation81_spill] sm:$0xff]  ;;  %v2792_v0 = vrot.slane %v6136_v23, %v4361_v11  ;;  %v6833_v17 = vld [vmem:[#allocation10_spill] sm:$0xff] }
  0xd1   : > { %4203 = vmatprep.mubr.msk.f32.mxu1 %vm4301_vm1, %v6651_v7  ;;  %v2840_v15 = vsel %vm946_vm5, %v6830_v28, %v2839_v9  ;;  %v2990_v18 = vsel %vm944_vm4, %v6832_v43, %v6831_v32  ;;  %v2835_v16 = vsel %vm950_vm7, %v6833_v17, %v2834_v8  ;;  %v2987_v53 = vsel %vm948_vm6, %v6773_v58, %v2986_v25  ;;  %v6836_v51 = vld [vmem:[#allocation5_spill] sm:$0xff]  ;;  %v6838_v58 = vld [vmem:[#allocation23_spill] sm:$0xff] }
  0xd2   : > { %4196 = vmatmul.mubr.msk.f32.gmra.mxu0 %vm989_vm9, %v2612_v12  ;;  %v2796_v3 = vrot.slane %v6155_v46, %v4361_v11  ;;  %v2800_v14 = vrot.slane %v6123_v41, %v4361_v11  ;;  %v2804_v5 = vrot.slane %v6140_v37, %v4361_v11  ;;  %v2846_v23 = vsel %vm944_vm4, %v2788_v61, %v6834_v38  ;;  %v6840_v45 = vld [vmem:[#allocation25_spill] sm:$0xff] }
  0xd3   : > { %4223 = vmatprep.mubr.msk.f32.mxu0 %vm4301_vm1, %v6651_v7  ;;  %v2995_v40 = vsel %vm942_vm3, %v6836_v51, %v6835_v13  ;;  %v3003_v47 = vsel %vm944_vm4, %v2596_v54, %v6837_v31  ;;  %v2841_v46 = vsel %vm948_vm6, %v6838_v58, %v2840_v15  ;;  %v2991_v41 = vsel %vm946_vm5, %v6782_v59, %v2990_v18  ;;  %v6839_v59 = vld [vmem:[#allocation11_spill] sm:$0xff] }
  0xd4   : > { %4204 = vmatmul.mubr.msk.f32.gmra.mxu1 %vm989_vm9, %v2822_v1  ;;  %v2847_v37 = vsel %vm946_vm5, %v2792_v0, %v2846_v23  ;;  %v3004_v33 = vsel %vm946_vm5, %v2600_v57, %v3003_v47  ;;  %v2996_v54 = vsel %vm944_vm4, %v6789_v50, %v2995_v40  ;;  %v2836_v55 = vsel %vm952_vm8, %v6839_v59, %v2835_v16 }
  0xd5   : > { %4206 = vmatprep.mubr.msk.f32.mxu1 %vm4301_vm1, %v6651_v7  ;;  %v2848_v52 = vsel %vm948_vm6, %v2796_v3, %v2847_v37  ;;  %v3005_v42 = vsel %vm948_vm6, %v6161_v24, %v3004_v33  ;;  %v2988_v57 = vsel %vm950_vm7, %v6777_v4, %v2987_v53  ;;  %v2842_v50 = vsel %vm950_vm7, %v6840_v45, %v2841_v46 }
  0xd6   : > { %4224 = vmatmul.mubr.msk.f32.vlgmr.msra.gmra.mxu0 %vm989_vm9, %v2982_v36  ;;  %v2849_v62 = vsel %vm950_vm7, %v2800_v14, %v2848_v52  ;;  %v3006_v63 = vsel %vm950_vm7, %v6169_v6, %v3005_v42  ;;  %v2992_v24 = vsel %vm948_vm6, %v6784_v39, %v2991_v41  ;;  %v2997_v4 = vsel %vm946_vm5, %v6791_v35, %v2996_v54  ;;  %v6841_v39 = vld [vmem:[#allocation26_spill] sm:$0xff] }
  0xd7   : > { %4226 = vmatprep.mubr.msk.f32.mxu0 %vm4301_vm1, %v6651_v7  ;;  %v2850_v1 = vsel %vm952_vm8, %v2804_v5, %v2849_v62  ;;  %v3007_v30 = vsel %vm952_vm8, %v2612_v12, %v3006_v63  ;;  %v2989_v6 = vsel %vm952_vm8, %v6770_v60, %v2988_v57  ;;  %v2843_v9 = vsel %vm952_vm8, %v6841_v39, %v2842_v50 }
  0xd8   : > { %4207 = vmatmul.mubr.msk.f32.gmra.mxu1 %vm989_vm9, %v2829_v34  ;;  %v2993_v12 = vsel %vm950_vm7, %v6787_v22, %v2992_v24  ;;  %v2998_v35 = vsel %vm948_vm6, %v6792_v21, %v2997_v4  ;;  %v6842_v22 = vld [vmem:[#allocation21_spill] sm:$0xff]  ;;  %v2808_v8 = vrot.slane %v6189_v29, %v4361_v11 }
  0xd9   : > { %4209 = vmatprep.mubr.msk.f32.mxu1 %vm4301_vm1, %v6651_v7  ;;  %v2994_v60 = vsel %vm952_vm8, %v6780_v26, %v2993_v12  ;;  %v2999_v27 = vsel %vm950_vm7, %v6794_v20, %v2998_v35  ;;  %v740_v26 = vcombine.high %v6189_v29, %v6189_v29 }
  0xda   : > { %4227 = vmatmul.mubr.msk.f32.gmra.mxu0 %vm989_vm9, %v2985_v56  ;;  %v3000_v21 = vsel %vm952_vm8, %v6842_v22, %v2999_v27 }
  0xdb   : > { %4229 = vmatprep.mubr.msk.f32.mxu0 %vm4301_vm1, %v6651_v7  ;;  %v2980_v20 = vrot.slane %v740_v26, %v4374_v19 }
  0xdc   : > { %4210 = vmatmul.mubr.msk.f32.gmra.mxu1 %vm989_vm9, %v2836_v55 }
  0xdd   : > { %4212 = vmatprep.mubr.msk.f32.mxu1 %vm4301_vm1, %v6651_v7 }
  0xde   : > { %4230 = vmatmul.mubr.msk.f32.gmra.mxu0 %vm989_vm9, %v2989_v6 }
  0xdf   : > { %4232 = vmatprep.mubr.msk.f32.mxu0 %vm4301_vm1, %v6651_v7 }
  0xe0   : > { %4213 = vmatmul.mubr.msk.f32.gmra.mxu1 %vm989_vm9, %v2843_v9  ;;  %v1074_v11 = vpop.f32.mrf.mxu0 }
  0xe1   : > { %4215 = vmatprep.mubr.msk.f32.mxu1 %vm4301_vm1, %v6651_v7 }
  0xe2   : > { %4233 = vmatmul.mubr.msk.f32.gmra.mxu0 %vm989_vm9, %v2994_v60  ;;  %v4041_v48 = vpop.f32.mrf.mxu0 }
  0xe3   : > { %4235 = vmatprep.mubr.msk.f32.mxu0 %vm4301_vm1, %v6651_v7 }
  0xe4   : > { %4216 = vmatmul.mubr.msk.f32.gmra.mxu1 %vm989_vm9, %v2850_v1 }
  0xe5   : > { %4218 = vmatprep.mubr.msk.f32.mxu1 %vm4301_vm1, %v6651_v7 }
  0xe6   : > { %4236 = vmatmul.mubr.msk.f32.gmra.mxu0 %vm989_vm9, %v3000_v21 }
  0xe7   : > { %4238 = vmatprep.mubr.msk.f32.mxu0 %vm4301_vm1, %v6651_v7 }
  0xe8   : > { %4219 = vmatmul.mubr.msk.f32.gmra.mxu1 %vm989_vm9, %v2808_v8 }
  0xe9   : > { %v1094_v44 = vpop.f32.mrf.mxu1 }
  0xea   : > { %4239 = vmatmul.mubr.msk.f32.gmra.mxu0 %vm989_vm9, %v3007_v30 }
  0xeb   : > { %4241 = vmatprep.mubr.msk.f32.mxu0 %vm4301_vm1, %v6651_v7  ;;  %v4053_v25 = vpop.f32.mrf.mxu1 }
  0xee   : > { %4242 = vmatmul.mubr.msk.f32.gmra.mxu0 %vm989_vm9, %v2980_v20 }
  0xf0   : > { %v1079_v2 = vpop.f32.mrf.mxu0 }
  0xf2   : > { %v4044_v29 = vpop.f32.mrf.mxu0 }
  0xf5   : > { %v1099_v36 = vpop.f32.mrf.mxu1 }
  0xf7   : > { %v4056_v49 = vpop.f32.mrf.mxu1 }
  0xfa   : > { %v1104_v34 = vpop.f32.mrf.mxu1 }
  0xfc   : > { %v4059_v56 = vpop.f32.mrf.mxu1 }
  0xfd   : > { %v1084_v10 = vpop.f32.mrf.mxu0 }
  0xff   : > { %v4047_v61 = vpop.f32.mrf.mxu0 }
 0x105   : > { %v1089_v28 = vpop.f32.mrf.mxu0 }
 0x107   : > { %v4050_v15 = vpop.f32.mrf.mxu0 }
 0x108   : > { %v1429_v19 = vpop.f32.mrf.mxu1 }
 0x109   : > { %v1430_v32 = vadd.f32 %v1429_v19, %v1074_v11 }
 0x10a   : > { %v4064_v43 = vpop.f32.mrf.mxu1 }
 0x10c   : > { %v1434_v7 = vpop.f32.mrf.mxu1 }
 0x10d   : > { %v1435_v18 = vadd.f32 %v1434_v7, %v1079_v2 }
 0x10e   : > { %v4067_v17 = vpop.f32.mrf.mxu1 }
 0x10f   : > { %v1618_v0 = vpop.f32.mrf.mxu0 }
 0x110   : > { %v1652_v16 = vadd.f32 %v1618_v0, %v1430_v32 }
 0x111   : > { %v4087_v53 = vpop.f32.mrf.mxu0 }
 0x114   : > { %v1439_v3 = vpop.f32.mrf.mxu1 }
 0x115   : > { %v1440_v14 = vadd.f32 %v1439_v3, %v1084_v10 }
 0x116   : > { %v1623_v5 = vpop.f32.mrf.mxu0  ;;  %v4070_v23 = vpop.f32.mrf.mxu1 }
 0x117   : > { %v1653_v38 = vadd.f32 %v1623_v5, %v1435_v18 }
 0x118   : > { %v4090_v13 = vpop.f32.mrf.mxu0 }
 0x11a   : > { %v1444_v51 = vpop.f32.mrf.mxu1 }
 0x11b   : > { %v1445_v40 = vadd.f32 %v1444_v51, %v1089_v28 }
 0x11c   : > { %v4073_v47 = vpop.f32.mrf.mxu1 }
 0x11d   : > { %v1628_v31 = vpop.f32.mrf.mxu0 }
 0x11e   : > { %v1654_v58 = vadd.f32 %v1628_v31, %v1440_v14 }
 0x11f   : > { %v4093_v46 = vpop.f32.mrf.mxu0 }
 0x123   : > { %v1449_v41 = vpop.f32.mrf.mxu1 }
 0x124   : > { %v1450_v37 = vadd.f32 %v1449_v41, %v1094_v44 }
 0x125   : > { %v1633_v33 = vpop.f32.mrf.mxu0  ;;  %v4076_v52 = vpop.f32.mrf.mxu1 }
 0x126   : > { %v1655_v54 = vadd.f32 %v1633_v33, %v1445_v40 }
 0x127   : > { %v4096_v42 = vpop.f32.mrf.mxu0 }
 0x128   : > { %v1454_v59 = vpop.f32.mrf.mxu1 }
 0x129   : > { %v1455_v55 = vadd.f32 %v1454_v59, %v1099_v36 }
 0x12a   : > { %v4079_v57 = vpop.f32.mrf.mxu1 }
 0x12c   : > { %v1638_v62 = vpop.f32.mrf.mxu0 }
 0x12d   : > { %v1459_v63 = vpop.f32.mrf.mxu1  ;;  %v1656_v45 = vadd.f32 %v1638_v62, %v1450_v37 }
 0x12e   : > { %v1460_v50 = vadd.f32 %v1459_v63, %v1104_v34  ;;  %v4099_v24 = vpop.f32.mrf.mxu0 }
 0x12f   : > { %v4082_v1 = vpop.f32.mrf.mxu1 }
 0x130   : > { %v1643_v30 = vpop.f32.mrf.mxu0 }
 0x131   : > { %v1657_v4 = vadd.f32 %v1643_v30, %v1455_v55 }
 0x132   : > { %v4102_v6 = vpop.f32.mrf.mxu0 }
 0x134   : > { %v1648_v39 = vpop.f32.mrf.mxu0 }
 0x135   : > { %v1658_v9 = vadd.f32 %v1648_v39, %v1460_v50 }
 0x136   : > { %v4105_v12 = vpop.f32.mrf.mxu0 }
 0x138   : > { %v1982_v35 = vpop.f32.mrf.mxu1 }
 0x139   : > { %v2016_v60 = vadd.f32 %v1982_v35, %v1652_v16 }
 0x13a   : > { %v4110_v27 = vpop.f32.mrf.mxu1 }
 0x13f   : > { %v1987_v22 = vpop.f32.mrf.mxu1 }
 0x140   : > { %v2017_v21 = vadd.f32 %v1987_v22, %v1653_v38 }
 0x141   : > { %v4113_v8 = vpop.f32.mrf.mxu1 }
 0x142   : > { %v2346_v26 = vpop.f32.mrf.mxu0 }
 0x143   : > { %v2380_v20 = vadd.f32 %v2346_v26, %v2016_v60  ;;  %v4302_v60 = vmov 1966171168  }
 0x144   : > { %v4133_v11 = vpop.f32.mrf.mxu0  ;;  %v3155_v27 = vunpack.c.l.s4 %v4302_v60 }
 0x149   : > { %v1992_v48 = vpop.f32.mrf.mxu1 }
 0x14a   : > { %v2018_v44 = vadd.f32 %v1992_v48, %v1654_v58  ;;  %v3156_v48 = vunpack.c.0.s8 %v3155_v27 }
 0x14b   : > { %v4116_v25 = vpop.f32.mrf.mxu1 }
 0x14d   : > { %v2351_v2 = vpop.f32.mrf.mxu0 }
 0x14e   : > { %v6361_v29 = vadd.f32 %v2351_v2, %v2017_v21 }
 0x14f   : > { %v4136_v36 = vpop.f32.mrf.mxu0 }
 0x154   : > { %v1997_v49 = vpop.f32.mrf.mxu1 }
 0x155   : > { %v6363_v34 = vadd.f32 %v1997_v49, %v1655_v54 }
 0x156   : > { %v4119_v56 = vpop.f32.mrf.mxu1 }
 0x157   : > { %v2356_v10 = vpop.f32.mrf.mxu0 }
 0x158   : > { %v6365_v61 = vadd.f32 %v2356_v10, %v2018_v44 }
 0x159   : > { %v4139_v28 = vpop.f32.mrf.mxu0 }
 0x15a   : > { %v6375_v28 = vld [vmem:[%s6508_s2] ss:$0 sm:$0xff] }
 0x160   : > { %v2002_v15 = vpop.f32.mrf.mxu1 }
 0x161   : > { %v6367_v19 = vadd.f32 %v2002_v15, %v1656_v45  ;;  %v6843_v15 = vld [vmem:[#allocation2_spill] sm:$0xff] }
 0x162   : > { %v4122_v32 = vpop.f32.mrf.mxu1 }
 0x163   : > { %v6378_v32 = vsub.s32 %v3156_v48, %v6843_v15 }
 0x165   : > { %v2361_v43 = vpop.f32.mrf.mxu0 }
 0x167   : > { %v4142_v7 = vpop.f32.mrf.mxu0 }
 0x168   : > { %v2007_v18 = vpop.f32.mrf.mxu1 }
 0x169   : > { %v2021_v0 = vadd.f32 %v2007_v18, %v1657_v4 }
 0x16a   : > { %v4125_v17 = vpop.f32.mrf.mxu1 }
 0x16c   : > { %v2012_v16 = vpop.f32.mrf.mxu1  ;;  %v2366_v53 = vpop.f32.mrf.mxu0 }
 0x16d   : > { %v2022_v3 = vadd.f32 %v2012_v16, %v1658_v9 }
 0x16e   : > { %v4128_v14 = vpop.f32.mrf.mxu1  ;;  %v4145_v5 = vpop.f32.mrf.mxu0 }
 0x16f   : > { %v2384_v5 = vadd.f32 %v2366_v53, %v6367_v19 }
 0x172   : > { %v2371_v38 = vpop.f32.mrf.mxu0  ;;  %v2542_v13 = vpop.f32.mrf.mxu1 }
 0x173   : > { %v6369_v23 = vadd.f32 %v2371_v38, %v2021_v0  ;;  %v2576_v8 = vadd.f32 %v2542_v13, %v2380_v20  ;;  %v2383_v0 = vadd.f32 %v2361_v43, %v6363_v34 }
 0x174   : > { %v4148_v51 = vpop.f32.mrf.mxu0  ;;  %v4156_v40 = vpop.f32.mrf.mxu1 }
 0x176   : > { %v2376_v31 = vpop.f32.mrf.mxu0  ;;  %v2547_v58 = vpop.f32.mrf.mxu1 }
 0x177   : > { %v2386_v47 = vadd.f32 %v2376_v31, %v2022_v3  ;;  %v2577_v36 = vadd.f32 %v2547_v58, %v6361_v29 }
 0x178   : > { %v4151_v46 = vpop.f32.mrf.mxu0  ;;  %v4159_v41 = vpop.f32.mrf.mxu1 }
 0x17a   : > { %v2738_v37 = vpop.f32.mrf.mxu0 }
 0x17b   : > { %v2772_v44 = vadd.f32 %v2738_v37, %v2576_v8 }
 0x17c   : > { %v4179_v33 = vpop.f32.mrf.mxu0  ;;  %v2552_v52 = vpop.f32.mrf.mxu1 }
 0x17d   : > { %v2578_v16 = vadd.f32 %v2552_v52, %v6365_v61 }
 0x17e   : > { %v2743_v54 = vpop.f32.mrf.mxu0  ;;  %v4162_v42 = vpop.f32.mrf.mxu1 }
 0x17f   : > { %v2773_v20 = vadd.f32 %v2743_v54, %v2577_v36 }
 0x180   : > { %v4182_v59 = vpop.f32.mrf.mxu0  ;;  %v2557_v55 = vpop.f32.mrf.mxu1 }
 0x181   : > { %v2579_v38 = vadd.f32 %v2557_v55, %v2383_v0 }
 0x182   : > { %v2748_v57 = vpop.f32.mrf.mxu0  ;;  %v4165_v62 = vpop.f32.mrf.mxu1 }
 0x183   : > { %v2774_v51 = vadd.f32 %v2748_v57, %v2578_v16 }
 0x184   : > { %v4185_v63 = vpop.f32.mrf.mxu0  ;;  %v2562_v45 = vpop.f32.mrf.mxu1 }
 0x185   : > { %v2580_v41 = vadd.f32 %v2562_v45, %v2384_v5 }
 0x186   : > { %v2753_v50 = vpop.f32.mrf.mxu0  ;;  %v4168_v24 = vpop.f32.mrf.mxu1 }
 0x187   : > { %v2775_v37 = vadd.f32 %v2753_v50, %v2579_v38 }
 0x188   : > { %v4188_v1 = vpop.f32.mrf.mxu0  ;;  %v2567_v30 = vpop.f32.mrf.mxu1 }
 0x189   : > { %v2581_v34 = vadd.f32 %v2567_v30, %v6369_v23 }
 0x18a   : > { %v2758_v4 = vpop.f32.mrf.mxu0  ;;  %v4171_v6 = vpop.f32.mrf.mxu1 }
 0x18b   : > { %v2776_v42 = vadd.f32 %v2758_v4, %v2580_v41 }
 0x18c   : > { %v4191_v39 = vpop.f32.mrf.mxu0  ;;  %v2572_v9 = vpop.f32.mrf.mxu1 }
 0x18d   : > { %v2582_v43 = vadd.f32 %v2572_v9, %v2386_v47 }
 0x18e   : > { %v4174_v12 = vpop.f32.mrf.mxu1  ;;  %v2763_v35 = vpop.f32.mrf.mxu0 }
 0x18f   : > { %v6389_v59 = vadd.f32 %v2763_v35, %v2581_v34 }
 0x190   : > { %v2934_v22 = vpop.f32.mrf.mxu1  ;;  %v4194_v21 = vpop.f32.mrf.mxu0 }
 0x191   : > { %v2968_v49 = vadd.f32 %v2934_v22, %v2772_v44 }
 0x192   : > { %v4202_v26 = vpop.f32.mrf.mxu1  ;;  %v2768_v11 = vpop.f32.mrf.mxu0 }
 0x193   : > { %v6391_v55 = vadd.f32 %v2768_v11, %v2582_v43 }
 0x194   : > { %v2939_v25 = vpop.f32.mrf.mxu1  ;;  %v4197_v2 = vpop.f32.mrf.mxu0 }
 0x195   : > { %v2969_v29 = vadd.f32 %v2939_v25, %v2773_v20 }
 0x196   : > { %v4205_v56 = vpop.f32.mrf.mxu1  ;;  %v3091_v10 = vpop.f32.mrf.mxu0 }
 0x197   : > { %v3125_v7 = vadd.f32 %v3091_v10, %v2968_v49 }
 0x198   : > { %v2944_v18 = vpop.f32.mrf.mxu1  ;;  %v4225_v17 = vpop.f32.mrf.mxu0 }
 0x199   : > { %v3139_v3 = vadd.f32 %v6375_v28, %v3125_v7  ;;  %v2970_v57 = vadd.f32 %v2944_v18, %v2774_v51 }
 0x19a   : > { %v4208_v14 = vpop.f32.mrf.mxu1  ;;  %v3096_v13 = vpop.f32.mrf.mxu0 }
 0x19b   : > { %v3153_v40 = vcombine.high %v3139_v3, %v3139_v3  ;;  %v3160_v31 = vrot.slane %v3139_v3, %v6378_v32  ;;  %v3126_v58 = vadd.f32 %v3096_v13, %v2969_v29 }
 0x19c   : > { %v2949_v46 = vpop.f32.mrf.mxu1  ;;  %v4228_v61 = vpop.f32.mrf.mxu0 }
 0x19d   : > { %v3167_v33 = vrot.slane %v3153_v40, %v6378_v32  ;;  %v3168_v52 = vcombine.high %v3160_v31, %v3160_v31  ;;  %v3176_v54 = vrot.slane %v3160_v31, %v6378_v32  ;;  %v3140_v19 = vadd.f32 %v6375_v28, %v3126_v58 }
 0x19e   : > { %v4211_v53 = vpop.f32.mrf.mxu1  ;;  %v3101_v62 = vpop.f32.mrf.mxu0  ;;  %v6396_v1 = vadd.f32 %v2949_v46, %v2775_v37 }
 0x19f   : > { %v3169_v63 = vcombine.high %v3167_v33, %v3167_v33  ;;  %v3183_v23 = vrot.slane %v3167_v33, %v6378_v32  ;;  %v3190_v47 = vrot.slane %v3168_v52, %v6378_v32  ;;  %v3202_v45 = vcombine.high %v3140_v19, %v3140_v19 }
 0x1a0   : > { %v2954_v50 = vpop.f32.mrf.mxu1  ;;  %v3209_v24 = vrot.slane %v3140_v19, %v6378_v32  ;;  %v3127_v30 = vadd.f32 %v3101_v62, %v2970_v57  ;;  %v4231_v6 = vpop.f32.mrf.mxu0 }
 0x1a1   : > { %v6398_v4 = vadd.f32 %v2954_v50, %v2776_v42  ;;  %v3197_v39 = vrot.slane %v3169_v63, %v6378_v32  ;;  %v3199_v9 = vcombine.high %v3183_v23, %v3183_v23  ;;  %v3461_v12 = vcombine.low %v3176_v54, %v3190_v47 }
 0x1a2   : > { %v3956_v35 = vcombine.high %v3176_v54, %v3190_v47  ;;  %v4214_v60 = vpop.f32.mrf.mxu1  ;;  %v3216_v27 = vrot.slane %v3202_v45, %v6378_v32  ;;  %v3217_v22 = vcombine.high %v3209_v24, %v3209_v24  ;;  %v3225_v21 = vrot.slane %v3209_v24, %v6378_v32  ;;  %v3106_v26 = vpop.f32.mrf.mxu0 }
 0x1a3   : > { %v3141_v8 = vadd.f32 %v6375_v28, %v3127_v30  ;;  %v3463_v11 = vcombine.low %v3183_v23, %v3197_v39  ;;  %v3470_v48 = vrot.slane %v3461_v12, %v6378_v32  ;;  %v3491_v25 = vrot.slane %v3199_v9, %v6378_v32 }
 0x1a4   : > { %v3477_v44 = vrot.slane %v3956_v35, %v6378_v32  ;;  %v2959_v2 = vpop.f32.mrf.mxu1  ;;  %v3201_v36 = vcombine.high %v3197_v39, %v3197_v39  ;;  %v3218_v49 = vcombine.high %v3216_v27, %v3216_v27  ;;  %v3232_v56 = vrot.slane %v3216_v27, %v6378_v32  ;;  %v4234_v15 = vpop.f32.mrf.mxu0 }
 0x1a5   : > { %v3239_v10 = vrot.slane %v3217_v22, %v6378_v32  ;;  %v3484_v20 = vrot.slane %v3463_v11, %v6378_v32  ;;  %v3247_v18 = vcombine.high %v3225_v21, %v3225_v21  ;;  %v3251_v0 = vcombine.high %v3141_v8, %v3141_v8 }
 0x1a6   : > { %v3492_v7 = vcombine.low %v3470_v48, %v3477_v44  ;;  %v4217_v17 = vpop.f32.mrf.mxu1  ;;  %v3246_v16 = vrot.slane %v3218_v49, %v6378_v32  ;;  %v3509_v3 = vcombine.low %v3201_v36, %v3225_v21  ;;  %v3258_v14 = vrot.slane %v3141_v8, %v6378_v32  ;;  %v3111_v5 = vpop.f32.mrf.mxu0 }
 0x1a7   : > { %v3249_v29 = vcombine.high %v3239_v10, %v3239_v10  ;;  %v3493_v38 = vcombine.low %v3484_v20, %v3491_v25  ;;  %v3510_v51 = vcombine.low %v3239_v10, %v3247_v18  ;;  %v3265_v40 = vrot.slane %v3251_v0, %v6378_v32 }
 0x1a8   : > { %v3500_v13 = vrot.slane %v3492_v7, %v6378_v32  ;;  %v2964_v31 = vpop.f32.mrf.mxu1  ;;  %v3518_v46 = vrot.slane %v3509_v3, %v6378_v32  ;;  %v3539_v41 = vrot.slane %v3246_v16, %v6378_v32  ;;  %v3957_v37 = vcombine.high %v3232_v56, %v3246_v16  ;;  %v4237_v34 = vpop.f32.mrf.mxu0 }
 0x1a9   : > { %v3511_v58 = vcombine.low %v3249_v29, %v3232_v56  ;;  %v3507_v43 = vrot.slane %v3493_v38, %v6378_v32  ;;  %v3525_v61 = vrot.slane %v3510_v51, %v6378_v32  ;;  %v3266_v33 = vcombine.high %v3258_v14, %v3258_v14 }
 0x1aa   : > { %v3267_v52 = vcombine.high %v3265_v40, %v3265_v40  ;;  %v4220_v54 = vpop.f32.mrf.mxu1  ;;  %v3566_v53 = vrot.slane %v3957_v37, %v6378_v32  ;;  %v3274_v42 = vrot.slane %v3258_v14, %v6378_v32  ;;  %v3281_v57 = vrot.slane %v3265_v40, %v6378_v32  ;;  %v3116_v62 = vpop.f32.mrf.mxu0 }
 0x1ab   : > { %v3532_v19 = vrot.slane %v3511_v58, %v6378_v32  ;;  %v3508_v63 = vcombine.low %v3500_v13, %v3507_v43  ;;  %v3540_v23 = vcombine.low %v3518_v46, %v3525_v61  ;;  %v3288_v47 = vrot.slane %v3266_v33, %v6378_v32 }
 0x1ac   : > { %v3295_v45 = vrot.slane %v3267_v52, %v6378_v32  ;;  %v3297_v24 = vcombine.high %v3281_v57, %v3281_v57  ;;  %v3587_v30 = vrot.slane %v3281_v57, %v6378_v32  ;;  %v3128_v6 = vadd.f32 %v3106_v26, %v6396_v1  ;;  %v4240_v39 = vpop.f32.mrf.mxu0 }
 0x1ad   : > { %v3541_v50 = vcombine.low %v3532_v19, %v3539_v41  ;;  %3805 = vst.msk [vmem:[%s6422_s15] sm:$0x7f] %vm3804_vm10, %v3508_v63  ;;  %v3548_v9 = vrot.slane %v3540_v23, %v6378_v32  ;;  %v3558_v12 = vcombine.low %v3274_v42, %v3288_v47  ;;  %v3958_v35 = vcombine.high %v3274_v42, %v3288_v47 }
 0x1ae   : > { %v3299_v60 = vcombine.high %v3295_v45, %v3295_v45  ;;  %v3605_v22 = vcombine.low %v3295_v45, %v3297_v24  ;;  %v3142_v21 = vadd.f32 %v6375_v28, %v3128_v6  ;;  %v2973_v8 = vadd.f32 %v2959_v2, %v6389_v59  ;;  %v3121_v11 = vpop.f32.mrf.mxu0 }
 0x1af   : > { %v3555_v27 = vrot.slane %v3541_v50, %v6378_v32  ;;  %v3573_v48 = vrot.slane %v3558_v12, %v6378_v32  ;;  %v3580_v1 = vrot.slane %v3958_v35, %v6378_v32  ;;  %v3129_v26 = vadd.f32 %v3111_v5, %v6398_v4 }
 0x1b0   : > { %v2974_v44 = vadd.f32 %v2964_v31, %v6391_v55  ;;  %v3300_v36 = vcombine.high %v3142_v21, %v3142_v21  ;;  %v3307_v49 = vrot.slane %v3142_v21, %v6378_v32  ;;  %v3614_v56 = vrot.slane %v3605_v22, %v6378_v32  ;;  %v4243_v10 = vpop.f32.mrf.mxu0 }
 0x1b1   : > { %v3556_v25 = vcombine.low %v3548_v9, %v3555_v27  ;;  %v3588_v15 = vcombine.low %v3566_v53, %v3573_v48  ;;  %v3589_v20 = vcombine.low %v3580_v1, %v3587_v30  ;;  %v3143_v59 = vadd.f32 %v6375_v28, %v3129_v26 }
 0x1b2   : > { %v3130_v2 = vadd.f32 %v3116_v62, %v2973_v8  ;;  %v3314_v7 = vrot.slane %v3300_v36, %v6378_v32  ;;  %v3315_v18 = vcombine.high %v3307_v49, %v3307_v49  ;;  %v3323_v4 = vrot.slane %v3307_v49, %v6378_v32 }
 0x1b3   : > { %3806 = vst.msk [vmem:[%s6422_s15 + $0x8] sm:$0x7f] %vm3804_vm10, %v3556_v25  ;;  %v3131_v55 = vadd.f32 %v3121_v11, %v2974_v44  ;;  %v3596_v0 = vrot.slane %v3588_v15, %v6378_v32  ;;  %v3603_v17 = vrot.slane %v3589_v20, %v6378_v32  ;;  %v3349_v16 = vcombine.high %v3143_v59, %v3143_v59 }
 0x1b4   : > { %v3356_v29 = vrot.slane %v3143_v59, %v6378_v32  ;;  %v3316_v3 = vcombine.high %v3314_v7, %v3314_v7  ;;  %v3330_v14 = vrot.slane %v3314_v7, %v6378_v32  ;;  %v3337_v5 = vrot.slane %v3315_v18, %v6378_v32 }
 0x1b5   : > { %v3345_v38 = vcombine.high %v3323_v4, %v3323_v4  ;;  %v3604_v13 = vcombine.low %v3596_v0, %v3603_v17  ;;  %v3606_v51 = vcombine.low %v3299_v60, %v3323_v4  ;;  %v3363_v40 = vrot.slane %v3349_v16, %v6378_v32 }
 0x1b6   : > { %v3364_v31 = vcombine.high %v3356_v29, %v3356_v29  ;;  %v3344_v58 = vrot.slane %v3316_v3, %v6378_v32  ;;  %v3347_v46 = vcombine.high %v3337_v5, %v3337_v5  ;;  %v3372_v37 = vrot.slane %v3356_v29, %v6378_v32 }
 0x1b7   : > { %v3607_v41 = vcombine.low %v3337_v5, %v3345_v38  ;;  %3807 = vst.msk [vmem:[%s6422_s15 + $0x10] sm:$0x7f] %vm3804_vm10, %v3604_v13  ;;  %v3621_v34 = vrot.slane %v3606_v51, %v6378_v32  ;;  %v3365_v43 = vcombine.high %v3363_v40, %v3363_v40  ;;  %v3379_v61 = vrot.slane %v3363_v40, %v6378_v32 }
 0x1b8   : > { %v3386_v33 = vrot.slane %v3364_v31, %v6378_v32  ;;  %v3635_v54 = vrot.slane %v3347_v46, %v6378_v32  ;;  %v3653_v19 = vcombine.low %v3330_v14, %v3344_v58  ;;  %v3959_v53 = vcombine.high %v3330_v14, %v3344_v58 }
 0x1b9   : > { %v3628_v52 = vrot.slane %v3607_v41, %v6378_v32  ;;  %v3636_v42 = vcombine.low %v3614_v56, %v3621_v34  ;;  %v3393_v57 = vrot.slane %v3365_v43, %v6378_v32  ;;  %v3394_v62 = vcombine.high %v3372_v37, %v3372_v37 }
 0x1ba   : > { %v3395_v63 = vcombine.high %v3379_v61, %v3379_v61  ;;  %v3662_v47 = vrot.slane %v3653_v19, %v6378_v32  ;;  %v3669_v45 = vrot.slane %v3959_v53, %v6378_v32  ;;  %v3396_v50 = vcombine.high %v3386_v33, %v3386_v33 }
 0x1bb   : > { %v3637_v23 = vcombine.low %v3628_v52, %v3635_v54  ;;  %v3644_v24 = vrot.slane %v3636_v42, %v6378_v32  ;;  %v3655_v30 = vcombine.low %v3372_v37, %v3386_v33  ;;  %v3683_v6 = vrot.slane %v3394_v62, %v6378_v32 }
 0x1bc   : > { %v3702_v39 = vcombine.low %v3393_v57, %v3395_v63  ;;  %v3684_v12 = vcombine.low %v3662_v47, %v3669_v45  ;;  %v3701_v35 = vcombine.low %v3396_v50, %v3379_v61  ;;  %v3144_v60 = vadd.f32 %v6375_v28, %v3130_v2 }
 0x1bd   : > { %v3651_v9 = vrot.slane %v3637_v23, %v6378_v32  ;;  %v3676_v27 = vrot.slane %v3655_v30, %v6378_v32  ;;  %v3145_v21 = vadd.f32 %v6375_v28, %v3131_v55  ;;  %v3397_v44 = vcombine.high %v3393_v57, %v3393_v57 }
 0x1be   : > { %v3717_v22 = vrot.slane %v3702_v39, %v6378_v32  ;;  %v3692_v11 = vrot.slane %v3684_v12, %v6378_v32  ;;  %v3710_v48 = vrot.slane %v3701_v35, %v6378_v32  ;;  %v3398_v1 = vcombine.high %v3144_v60, %v3144_v60 }
 0x1bf   : > { %v3652_v8 = vcombine.low %v3644_v24, %v3651_v9  ;;  %v3685_v26 = vcombine.low %v3676_v27, %v3683_v6  ;;  %v3405_v25 = vrot.slane %v3144_v60, %v6378_v32  ;;  %v3453_v36 = vrot.slane %v3145_v21, %v6378_v32 }
 0x1c0   : > { %v3732_v49 = vcombine.low %v3710_v48, %v3717_v22  ;;  %v3412_v56 = vrot.slane %v3398_v1, %v6378_v32 }
 0x1c1   : > { %3808 = vst.msk [vmem:[%s6422_s15 + $0x18] sm:$0x7f] %vm3804_vm10, %v3652_v8  ;;  %v3699_v28 = vrot.slane %v3685_v26, %v6378_v32  ;;  %v3413_v10 = vcombine.high %v3405_v25, %v3405_v25  ;;  %v3421_v15 = vrot.slane %v3405_v25, %v6378_v32  ;;  %v3460_v20 = vrot.slane %v3453_v36, %v6378_v32 }
 0x1c2   : > { %v3740_v59 = vrot.slane %v3732_v49, %v6378_v32  ;;  %v3414_v2 = vcombine.high %v3412_v56, %v3412_v56  ;;  %v3428_v7 = vrot.slane %v3412_v56, %v6378_v32 }
 0x1c3   : > { %v3700_v18 = vcombine.low %v3692_v11, %v3699_v28  ;;  %v3435_v4 = vrot.slane %v3413_v10, %v6378_v32  ;;  %v3703_v55 = vcombine.low %v3397_v44, %v3421_v15  ;;  %v3779_v0 = vrot.slane %v3460_v20, %v6378_v32 }
 0x1c4   : > { %v3442_v17 = vrot.slane %v3414_v2, %v6378_v32 }
 0x1c5   : > { %3809 = vst.msk [vmem:[%s6422_s15 + $0x20] sm:$0x7f] %vm3804_vm10, %v3700_v18  ;;  %v3724_v16 = vrot.slane %v3703_v55, %v6378_v32  ;;  %v3731_v29 = vrot.slane %v3435_v4, %v6378_v32  ;;  %v3960_v3 = vcombine.high %v3421_v15, %v3435_v4 }
 0x1c6   : > { %v3750_v14 = vcombine.low %v3428_v7, %v3442_v17  ;;  %v3961_v5 = vcombine.high %v3428_v7, %v3442_v17 }
 0x1c7   : > { %v3733_v38 = vcombine.low %v3724_v16, %v3731_v29  ;;  %v3758_v13 = vrot.slane %v3960_v3, %v6378_v32 }
 0x1c8   : > { %v3765_v51 = vrot.slane %v3750_v14, %v6378_v32  ;;  %v3772_v40 = vrot.slane %v3961_v5, %v6378_v32 }
 0x1c9   : > { %v3747_v31 = vrot.slane %v3733_v38, %v6378_v32 }
 0x1ca   : > { %v3780_v58 = vcombine.low %v3758_v13, %v3765_v51  ;;  %v3781_v46 = vcombine.low %v3772_v40, %v3779_v0 }
 0x1cb   : > { %v3748_v41 = vcombine.low %v3740_v59, %v3747_v31 }
 0x1cc   : > { %v3788_v37 = vrot.slane %v3780_v58, %v6378_v32  ;;  %v3795_v34 = vrot.slane %v3781_v46, %v6378_v32 }
 0x1cd   : > { %3810 = vst.msk [vmem:[%s6422_s15 + $0x28] sm:$0x7f] %vm3804_vm10, %v3748_v41 }
 0x1ce   : > { %v3796_v43 = vcombine.low %v3788_v37, %v3795_v34 }
 0x1d0   : > { %3811 = vst.msk [vmem:[%s6422_s15 + $0x30] sm:$0x7f] %vm3804_vm10, %v3796_v43 }
 0x1d1 PF: > { %s13_s12 = sadd.s32 1, %s4297_s12  }
 0x1d2   : > { %p10_p4 = scmp.ge.s32.totalorder %s13_s12, 4  }
 0x1d4   :  { %12 = sbr.rel (!%p10_p4) target bundleno = 1 (0x1), region = 70 }

</bundles_post_ra>
